<compile_context>
chip_gen: v7x
topology: tpu7x:2x2x1
jax: 0.10.0
libtpu: 0.0.40
codegen_flags: <defaults>
</compile_context>

<pallas_src>
import functools
import math

import jax
import jax.numpy as jnp
from jax.experimental import pallas as pl
from jax.experimental.pallas import tpu as pltpu

LN_EPS = 1e-5  # torch.nn.LayerNorm default


def _layernorm(x, w, b):
    mu = jnp.mean(x, axis=-1, keepdims=True)
    xc = x - mu
    var = jnp.mean(xc * xc, axis=-1, keepdims=True)
    return xc * jax.lax.rsqrt(var + LN_EPS) * w + b


def _resblock_kernel(x_ref,
                     ln1w_ref, ln1b_ref,
                     wqkv_ref, bqkv_ref,
                     wo_ref, bo_ref,
                     ln2w_ref, ln2b_ref,
                     wfc_ref, bfc_ref, wproj_ref, bproj_ref,
                     o_ref, *, n_head, seq_len):
    # x block: (1, Lp, E), f32
    x = x_ref[0]
    Lp, E = x.shape
    H = n_head
    dh = E // H
    scale = 1.0 / math.sqrt(dh)

    # ----- self-attention on ln_1(x) -----
    h = _layernorm(x, ln1w_ref[...], ln1b_ref[...])

    # fused QKV projection: one (Lp,E)x(E,3E) MXU matmul, bf16 in / f32 acc
    qkv = jnp.dot(h.astype(jnp.bfloat16), wqkv_ref[...],
                  preferred_element_type=jnp.float32) + bqkv_ref[...]     # (Lp, 3E)

    q = (qkv[:, :E] * scale).reshape(Lp, H, dh)
    k = qkv[:, E:2 * E].reshape(Lp, H, dh)
    v = qkv[:, 2 * E:].reshape(Lp, H, dh)
    qh = jnp.transpose(q, (1, 0, 2)).astype(jnp.bfloat16)                 # (H, Lp, dh)
    kh = jnp.transpose(k, (1, 0, 2)).astype(jnp.bfloat16)
    vh = jnp.transpose(v, (1, 0, 2)).astype(jnp.bfloat16)

    # head-batched scores: (H, Lq, Lk)
    s = jnp.einsum('hqd,hkd->hqk', qh, kh, preferred_element_type=jnp.float32)

    # TODO(synk): attn_mask path not implemented (module default is attn_mask=None).
    if seq_len < Lp:
        key_valid = jax.lax.broadcasted_iota(jnp.int32, (1, 1, Lp), 2) < seq_len
        s = jnp.where(key_valid, s, -1e30)

    s = s - jnp.max(s, axis=-1, keepdims=True)
    p = jnp.exp(s)
    denom = jnp.sum(p, axis=-1, keepdims=True)
    p = p * pl.reciprocal(denom, approx=True)

    ctx = jnp.einsum('hqk,hkd->hqd', p.astype(jnp.bfloat16), vh,
                     preferred_element_type=jnp.float32)                  # (H, Lp, dh)
    attn = jnp.transpose(ctx, (1, 0, 2)).reshape(Lp, E)

    attn = (jnp.dot(attn.astype(jnp.bfloat16), wo_ref[...],
                    preferred_element_type=jnp.float32) + bo_ref[...])

    # residual 1 (DropPath(rate=0.0) is identity)
    x = x + attn

    # ----- MLP on ln_2(x): Linear(E,4E) -> QuickGELU -> Linear(4E,E) -----
    h2 = _layernorm(x, ln2w_ref[...], ln2b_ref[...])
    f = (jnp.dot(h2.astype(jnp.bfloat16), wfc_ref[...],
                 preferred_element_type=jnp.float32) + bfc_ref[...])
    f = f * jax.nn.sigmoid(1.702 * f)                                     # QuickGELU, f32
    m = (jnp.dot(f.astype(jnp.bfloat16), wproj_ref[...],
                 preferred_element_type=jnp.float32) + bproj_ref[...])

    # residual 2
    o_ref[0] = x + m


_PARAM_ORDER = ("ln1_w", "ln1_b",
                "wqkv", "bqkv",
                "wo", "bo",
                "ln2_w", "ln2_b",
                "wfc", "bfc", "wproj", "bproj")


def _apply_block(x_nle, p, n_head, seq_len):
    N, Lp, E = x_nle.shape
    kern = functools.partial(_resblock_kernel, n_head=n_head, seq_len=seq_len)
    params = [p[key] for key in _PARAM_ORDER]

    in_specs = [pl.BlockSpec((1, Lp, E), lambda b: (b, 0, 0))]
    for a in params:                                   # all params are 2-D, weight-resident
        in_specs.append(pl.BlockSpec(a.shape, lambda b: (0, 0)))

    return pl.pallas_call(
        kern,
        out_shape=jax.ShapeDtypeStruct((N, Lp, E), jnp.float32),
        grid=(N,),
        in_specs=in_specs,
        out_specs=pl.BlockSpec((1, Lp, E), lambda b: (b, 0, 0)),
        compiler_params=pltpu.CompilerParams(
            dimension_semantics=("parallel",),
            vmem_limit_bytes=64 * 1024 * 1024),
    )(x_nle, *params)


def transformer_forward(x_lne, layer_params, n_head):
    """x_lne: (L, N, E) seq-first, as in the PyTorch module."""
    L, N, E = x_lne.shape
    Lp = ((L + 7) // 8) * 8                            # pad seq to sublane multiple
    x = jnp.transpose(x_lne, (1, 0, 2)).astype(jnp.float32)      # (N, L, E)
    if Lp != L:
        x = jnp.pad(x, ((0, 0), (0, Lp - L), (0, 0)))
    for p in layer_params:
        x = _apply_block(x, p, n_head, seq_len=L)
    x = x[:, :L]
    return jnp.transpose(x, (1, 0, 2))                 # back to (L, N, E)


# ---------- parameter construction (torch layout) + host-side packing ----------

def init_params_torch_layout(key, width, layers):
    """Params in the PyTorch module's native layouts (nn.Linear: (out, in))."""
    E = width
    params = []

    def nrm(k, shape, scale=0.02):
        return (scale * jax.random.normal(k, shape)).astype(jnp.float32)

    for _ in range(layers):
        key, *ks = jax.random.split(key, 9)
        params.append(dict(
            ln1_w=jnp.ones((E,), jnp.float32),
            ln1_b=jnp.zeros((E,), jnp.float32),
            in_proj_weight=nrm(ks[0], (3 * E, E)),      # nn.MultiheadAttention
            in_proj_bias=nrm(ks[1], (3 * E,), 0.01),
            out_proj_weight=nrm(ks[2], (E, E)),
            out_proj_bias=nrm(ks[3], (E,), 0.01),
            ln2_w=jnp.ones((E,), jnp.float32),
            ln2_b=jnp.zeros((E,), jnp.float32),
            c_fc_weight=nrm(ks[4], (4 * E, E)),         # nn.Linear (out, in)
            c_fc_bias=nrm(ks[5], (4 * E,), 0.01),
            c_proj_weight=nrm(ks[6], (E, 4 * E)),
            c_proj_bias=nrm(ks[7], (E,), 0.01),
        ))
    return params


def pack_params(torch_layers):
    """Host-side relayout: weights -> (in, out) bf16, qkv fused; biases/LN -> (1, out) f32."""
    packed = []
    for p in torch_layers:
        packed.append(dict(
            ln1_w=p["ln1_w"].reshape(1, -1).astype(jnp.float32),
            ln1_b=p["ln1_b"].reshape(1, -1).astype(jnp.float32),
            wqkv=jnp.transpose(p["in_proj_weight"]).astype(jnp.bfloat16),   # (E, 3E)
            bqkv=p["in_proj_bias"].reshape(1, -1).astype(jnp.float32),
            wo=jnp.transpose(p["out_proj_weight"]).astype(jnp.bfloat16),    # (E, E)
            bo=p["out_proj_bias"].reshape(1, -1).astype(jnp.float32),
            ln2_w=p["ln2_w"].reshape(1, -1).astype(jnp.float32),
            ln2_b=p["ln2_b"].reshape(1, -1).astype(jnp.float32),
            wfc=jnp.transpose(p["c_fc_weight"]).astype(jnp.bfloat16),       # (E, 4E)
            bfc=p["c_fc_bias"].reshape(1, -1).astype(jnp.float32),
            wproj=jnp.transpose(p["c_proj_weight"]).astype(jnp.bfloat16),   # (4E, E)
            bproj=p["c_proj_bias"].reshape(1, -1).astype(jnp.float32),
        ))
    return packed


if __name__ == "__main__":
    # Small config consistent with Transformer(width, layers, heads)
    width, layers, heads = 32, 2, 4
    L, N = 8, 2  # seq length, batch

    key = jax.random.PRNGKey(0)
    key, pkey, xkey = jax.random.split(key, 3)
    torch_params = init_params_torch_layout(pkey, width, layers)
    layer_params = pack_params(torch_params)
    x = jax.random.normal(xkey, (L, N, width), dtype=jnp.float32)

    fwd = jax.jit(functools.partial(transformer_forward, n_head=heads))
    out = fwd(x, layer_params)
    jax.block_until_ready(out)
    assert out.shape == (L, N, width) and out.dtype == jnp.float32
    assert bool(jnp.all(jnp.isfinite(out)))
    print("KERNEL_OK")
</pallas_src>

<mosaic_0001>
module attributes {stable_mosaic.version = 11 : i64} {
  func.func @_resblock_kernel(%arg0: i32, %arg1: memref<1x8x32xf32, #tpu.memory_space<vmem>>, %arg2: memref<1x32xf32, #tpu.memory_space<vmem>>, %arg3: memref<1x32xf32, #tpu.memory_space<vmem>>, %arg4: memref<32x96xbf16, #tpu.memory_space<vmem>>, %arg5: memref<1x96xf32, #tpu.memory_space<vmem>>, %arg6: memref<32x32xbf16, #tpu.memory_space<vmem>>, %arg7: memref<1x32xf32, #tpu.memory_space<vmem>>, %arg8: memref<1x32xf32, #tpu.memory_space<vmem>>, %arg9: memref<1x32xf32, #tpu.memory_space<vmem>>, %arg10: memref<32x128xbf16, #tpu.memory_space<vmem>>, %arg11: memref<1x128xf32, #tpu.memory_space<vmem>>, %arg12: memref<128x32xbf16, #tpu.memory_space<vmem>>, %arg13: memref<1x32xf32, #tpu.memory_space<vmem>>, %arg14: memref<1x8x32xf32, #tpu.memory_space<vmem>>) attributes {dimension_semantics = [#tpu.dimension_semantics<parallel>], iteration_bounds = array<i64: 2>, scalar_prefetch = 0 : i64, scratch_operands = 0 : i64, tpu.core_type = #tpu.core_type<tc>, window_params = [{transform_indices = @transform_0, window_bounds = array<i64: 1, 8, 32>}, {pipeline_mode = #tpu.pipeline_mode<synchronous>, transform_indices = @transform_1, window_bounds = array<i64: 1, 32>}, {pipeline_mode = #tpu.pipeline_mode<synchronous>, transform_indices = @transform_2, window_bounds = array<i64: 1, 32>}, {pipeline_mode = #tpu.pipeline_mode<synchronous>, transform_indices = @transform_3, window_bounds = array<i64: 32, 96>}, {pipeline_mode = #tpu.pipeline_mode<synchronous>, transform_indices = @transform_4, window_bounds = array<i64: 1, 96>}, {pipeline_mode = #tpu.pipeline_mode<synchronous>, transform_indices = @transform_5, window_bounds = array<i64: 32, 32>}, {pipeline_mode = #tpu.pipeline_mode<synchronous>, transform_indices = @transform_6, window_bounds = array<i64: 1, 32>}, {pipeline_mode = #tpu.pipeline_mode<synchronous>, transform_indices = @transform_7, window_bounds = array<i64: 1, 32>}, {pipeline_mode = #tpu.pipeline_mode<synchronous>, transform_indices = @transform_8, window_bounds = array<i64: 1, 32>}, {pipeline_mode = #tpu.pipeline_mode<synchronous>, transform_indices = @transform_9, window_bounds = array<i64: 32, 128>}, {pipeline_mode = #tpu.pipeline_mode<synchronous>, transform_indices = @transform_10, window_bounds = array<i64: 1, 128>}, {pipeline_mode = #tpu.pipeline_mode<synchronous>, transform_indices = @transform_11, window_bounds = array<i64: 128, 32>}, {pipeline_mode = #tpu.pipeline_mode<synchronous>, transform_indices = @transform_12, window_bounds = array<i64: 1, 32>}, {transform_indices = @transform_13, window_bounds = array<i64: 1, 8, 32>}]} {
    %c0 = arith.constant 0 : index
    %c0_0 = arith.constant 0 : index
    %c0_1 = arith.constant 0 : index
    %0 = vector.load %arg1[%c0, %c0_0, %c0_1] : memref<1x8x32xf32, #tpu.memory_space<vmem>>, vector<1x8x32xf32>
    %1 = vector.shape_cast %0 : vector<1x8x32xf32> to vector<8x32xf32>
    %c0_2 = arith.constant 0 : index
    %c0_3 = arith.constant 0 : index
    %2 = vector.load %arg2[%c0_2, %c0_3] : memref<1x32xf32, #tpu.memory_space<vmem>>, vector<1x32xf32>
    %c0_4 = arith.constant 0 : index
    %c0_5 = arith.constant 0 : index
    %3 = vector.load %arg3[%c0_4, %c0_5] : memref<1x32xf32, #tpu.memory_space<vmem>>, vector<1x32xf32>
    %cst = arith.constant dense<0.000000e+00> : vector<8xf32>
    %4 = vector.multi_reduction <add>, %1, %cst [1] : vector<8x32xf32> to vector<8xf32>
    %5 = vector.shape_cast %4 : vector<8xf32> to vector<8x1xf32>
    %cst_6 = arith.constant 3.200000e+01 : f32
    %6 = vector.broadcast %cst_6 : f32 to vector<8x1xf32>
    %7 = arith.divf %5, %6 : vector<8x1xf32>
    %8 = vector.broadcast %7 : vector<8x1xf32> to vector<8x32xf32>
    %9 = arith.subf %1, %8 : vector<8x32xf32>
    %10 = arith.mulf %9, %9 : vector<8x32xf32>
    %cst_7 = arith.constant dense<0.000000e+00> : vector<8xf32>
    %11 = vector.multi_reduction <add>, %10, %cst_7 [1] : vector<8x32xf32> to vector<8xf32>
    %12 = vector.shape_cast %11 : vector<8xf32> to vector<8x1xf32>
    %cst_8 = arith.constant 3.200000e+01 : f32
    %13 = vector.broadcast %cst_8 : f32 to vector<8x1xf32>
    %14 = arith.divf %12, %13 : vector<8x1xf32>
    %cst_9 = arith.constant 9.99999974E-6 : f32
    %15 = vector.broadcast %cst_9 : f32 to vector<8x1xf32>
    %16 = arith.addf %14, %15 : vector<8x1xf32>
    %17 = math.rsqrt %16 : vector<8x1xf32>
    %18 = vector.broadcast %17 : vector<8x1xf32> to vector<8x32xf32>
    %19 = arith.mulf %9, %18 : vector<8x32xf32>
    %20 = vector.broadcast %2 : vector<1x32xf32> to vector<8x32xf32>
    %21 = arith.mulf %19, %20 : vector<8x32xf32>
    %22 = vector.broadcast %3 : vector<1x32xf32> to vector<8x32xf32>
    %23 = arith.addf %21, %22 : vector<8x32xf32>
    %24 = arith.truncf %23 : vector<8x32xf32> to vector<8x32xbf16>
    %c0_10 = arith.constant 0 : index
    %c0_11 = arith.constant 0 : index
    %25 = vector.load %arg4[%c0_10, %c0_11] : memref<32x96xbf16, #tpu.memory_space<vmem>>, vector<32x96xbf16>
    %cst_12 = arith.constant dense<0.000000e+00> : vector<8x96xf32>
    %26 = tpu.matmul %24, %25, %cst_12 {dimension_numbers = #tpu.dot_dimension_numbers<[1], [0], [0], [1], [0, 0, 1, 1], [], []>} : vector<8x32xbf16>, vector<32x96xbf16>, vector<8x96xf32> -> vector<8x96xf32>
    %c0_13 = arith.constant 0 : index
    %c0_14 = arith.constant 0 : index
    %27 = vector.load %arg5[%c0_13, %c0_14] : memref<1x96xf32, #tpu.memory_space<vmem>>, vector<1x96xf32>
    %28 = vector.broadcast %27 : vector<1x96xf32> to vector<8x96xf32>
    %29 = arith.addf %26, %28 : vector<8x96xf32>
    %30 = vector.extract_strided_slice %29 {offsets = [0, 0], sizes = [8, 32], strides = [1, 1]} : vector<8x96xf32> to vector<8x32xf32>
    %cst_15 = arith.constant 0.353553385 : f32
    %31 = vector.broadcast %cst_15 : f32 to vector<8x32xf32>
    %32 = arith.mulf %30, %31 : vector<8x32xf32>
    %33 = vector.shape_cast %32 : vector<8x32xf32> to vector<8x4x8xf32>
    %34 = vector.extract_strided_slice %29 {offsets = [0, 32], sizes = [8, 32], strides = [1, 1]} : vector<8x96xf32> to vector<8x32xf32>
    %35 = vector.shape_cast %34 : vector<8x32xf32> to vector<8x4x8xf32>
    %36 = vector.extract_strided_slice %29 {offsets = [0, 64], sizes = [8, 32], strides = [1, 1]} : vector<8x96xf32> to vector<8x32xf32>
    %37 = vector.shape_cast %36 : vector<8x32xf32> to vector<8x4x8xf32>
    %38 = tpu.transpose %33, [1, 0, 2] : vector<8x4x8xf32> -> vector<4x8x8xf32>
    %39 = arith.truncf %38 : vector<4x8x8xf32> to vector<4x8x8xbf16>
    %40 = tpu.transpose %35, [1, 0, 2] : vector<8x4x8xf32> -> vector<4x8x8xf32>
    %41 = arith.truncf %40 : vector<4x8x8xf32> to vector<4x8x8xbf16>
    %42 = tpu.transpose %37, [1, 0, 2] : vector<8x4x8xf32> -> vector<4x8x8xf32>
    %43 = arith.truncf %42 : vector<4x8x8xf32> to vector<4x8x8xbf16>
    "tpu.trace_start"() <{level = 10 : i32, message = "hqd,hkd->hqk"}> : () -> ()
    %cst_16 = arith.constant dense<0.000000e+00> : vector<4x8x8xf32>
    %44 = tpu.matmul %39, %41, %cst_16 {dimension_numbers = #tpu.dot_dimension_numbers<[2], [2], [1], [1], [0, 0, 0, 1, 1, 1], [0], [0]>} : vector<4x8x8xbf16>, vector<4x8x8xbf16>, vector<4x8x8xf32> -> vector<4x8x8xf32>
    "tpu.trace_stop"() : () -> ()
    %cst_17 = arith.constant dense<0xFF800000> : vector<4x8xf32>
    %45 = vector.multi_reduction <maximumf>, %44, %cst_17 [2] : vector<4x8x8xf32> to vector<4x8xf32>
    %46 = vector.shape_cast %45 : vector<4x8xf32> to vector<4x8x1xf32>
    %47 = vector.broadcast %46 : vector<4x8x1xf32> to vector<4x8x8xf32>
    %48 = arith.subf %44, %47 : vector<4x8x8xf32>
    %49 = math.exp %48 : vector<4x8x8xf32>
    %cst_18 = arith.constant dense<0.000000e+00> : vector<4x8xf32>
    %50 = vector.multi_reduction <add>, %49, %cst_18 [2] : vector<4x8x8xf32> to vector<4x8xf32>
    %51 = vector.shape_cast %50 : vector<4x8xf32> to vector<4x8x1xf32>
    %52 = tpu.reciprocal %51 {approx = true} : vector<4x8x1xf32> -> vector<4x8x1xf32>
    %53 = vector.broadcast %52 : vector<4x8x1xf32> to vector<4x8x8xf32>
    %54 = arith.mulf %49, %53 : vector<4x8x8xf32>
    %55 = arith.truncf %54 : vector<4x8x8xf32> to vector<4x8x8xbf16>
    "tpu.trace_start"() <{level = 10 : i32, message = "hqk,hkd->hqd"}> : () -> ()
    %cst_19 = arith.constant dense<0.000000e+00> : vector<4x8x8xf32>
    %56 = tpu.matmul %55, %43, %cst_19 {dimension_numbers = #tpu.dot_dimension_numbers<[2], [1], [1], [2], [0, 0, 0, 1, 1, 2], [0], [0]>} : vector<4x8x8xbf16>, vector<4x8x8xbf16>, vector<4x8x8xf32> -> vector<4x8x8xf32>
    "tpu.trace_stop"() : () -> ()
    %57 = tpu.transpose %56, [1, 0, 2] : vector<4x8x8xf32> -> vector<8x4x8xf32>
    %58 = vector.shape_cast %57 : vector<8x4x8xf32> to vector<8x32xf32>
    %59 = arith.truncf %58 : vector<8x32xf32> to vector<8x32xbf16>
    %c0_20 = arith.constant 0 : index
    %c0_21 = arith.constant 0 : index
    %60 = vector.load %arg6[%c0_20, %c0_21] : memref<32x32xbf16, #tpu.memory_space<vmem>>, vector<32x32xbf16>
    %cst_22 = arith.constant dense<0.000000e+00> : vector<8x32xf32>
    %61 = tpu.matmul %59, %60, %cst_22 {dimension_numbers = #tpu.dot_dimension_numbers<[1], [0], [0], [1], [0, 0, 1, 1], [], []>} : vector<8x32xbf16>, vector<32x32xbf16>, vector<8x32xf32> -> vector<8x32xf32>
    %c0_23 = arith.constant 0 : index
    %c0_24 = arith.constant 0 : index
    %62 = vector.load %arg7[%c0_23, %c0_24] : memref<1x32xf32, #tpu.memory_space<vmem>>, vector<1x32xf32>
    %63 = vector.broadcast %62 : vector<1x32xf32> to vector<8x32xf32>
    %64 = arith.addf %61, %63 : vector<8x32xf32>
    %65 = arith.addf %1, %64 : vector<8x32xf32>
    %c0_25 = arith.constant 0 : index
    %c0_26 = arith.constant 0 : index
    %66 = vector.load %arg8[%c0_25, %c0_26] : memref<1x32xf32, #tpu.memory_space<vmem>>, vector<1x32xf32>
    %c0_27 = arith.constant 0 : index
    %c0_28 = arith.constant 0 : index
    %67 = vector.load %arg9[%c0_27, %c0_28] : memref<1x32xf32, #tpu.memory_space<vmem>>, vector<1x32xf32>
    %cst_29 = arith.constant dense<0.000000e+00> : vector<8xf32>
    %68 = vector.multi_reduction <add>, %65, %cst_29 [1] : vector<8x32xf32> to vector<8xf32>
    %69 = vector.shape_cast %68 : vector<8xf32> to vector<8x1xf32>
    %cst_30 = arith.constant 3.200000e+01 : f32
    %70 = vector.broadcast %cst_30 : f32 to vector<8x1xf32>
    %71 = arith.divf %69, %70 : vector<8x1xf32>
    %72 = vector.broadcast %71 : vector<8x1xf32> to vector<8x32xf32>
    %73 = arith.subf %65, %72 : vector<8x32xf32>
    %74 = arith.mulf %73, %73 : vector<8x32xf32>
    %cst_31 = arith.constant dense<0.000000e+00> : vector<8xf32>
    %75 = vector.multi_reduction <add>, %74, %cst_31 [1] : vector<8x32xf32> to vector<8xf32>
    %76 = vector.shape_cast %75 : vector<8xf32> to vector<8x1xf32>
    %cst_32 = arith.constant 3.200000e+01 : f32
    %77 = vector.broadcast %cst_32 : f32 to vector<8x1xf32>
    %78 = arith.divf %76, %77 : vector<8x1xf32>
    %cst_33 = arith.constant 9.99999974E-6 : f32
    %79 = vector.broadcast %cst_33 : f32 to vector<8x1xf32>
    %80 = arith.addf %78, %79 : vector<8x1xf32>
    %81 = math.rsqrt %80 : vector<8x1xf32>
    %82 = vector.broadcast %81 : vector<8x1xf32> to vector<8x32xf32>
    %83 = arith.mulf %73, %82 : vector<8x32xf32>
    %84 = vector.broadcast %66 : vector<1x32xf32> to vector<8x32xf32>
    %85 = arith.mulf %83, %84 : vector<8x32xf32>
    %86 = vector.broadcast %67 : vector<1x32xf32> to vector<8x32xf32>
    %87 = arith.addf %85, %86 : vector<8x32xf32>
    %88 = arith.truncf %87 : vector<8x32xf32> to vector<8x32xbf16>
    %c0_34 = arith.constant 0 : index
    %c0_35 = arith.constant 0 : index
    %89 = vector.load %arg10[%c0_34, %c0_35] : memref<32x128xbf16, #tpu.memory_space<vmem>>, vector<32x128xbf16>
    %cst_36 = arith.constant dense<0.000000e+00> : vector<8x128xf32>
    %90 = tpu.matmul %88, %89, %cst_36 {dimension_numbers = #tpu.dot_dimension_numbers<[1], [0], [0], [1], [0, 0, 1, 1], [], []>} : vector<8x32xbf16>, vector<32x128xbf16>, vector<8x128xf32> -> vector<8x128xf32>
    %c0_37 = arith.constant 0 : index
    %c0_38 = arith.constant 0 : index
    %91 = vector.load %arg11[%c0_37, %c0_38] : memref<1x128xf32, #tpu.memory_space<vmem>>, vector<1x128xf32>
    %92 = vector.broadcast %91 : vector<1x128xf32> to vector<8x128xf32>
    %93 = arith.addf %90, %92 : vector<8x128xf32>
    %cst_39 = arith.constant 1.702000e+00 : f32
    %94 = vector.broadcast %cst_39 : f32 to vector<8x128xf32>
    %95 = arith.mulf %94, %93 : vector<8x128xf32>
    %96 = arith.negf %95 : vector<8x128xf32>
    %97 = math.exp %96 : vector<8x128xf32>
    %cst_40 = arith.constant 1.000000e+00 : f32
    %98 = vector.broadcast %cst_40 : f32 to vector<8x128xf32>
    %99 = arith.addf %98, %97 : vector<8x128xf32>
    %100 = arith.divf %98, %99 : vector<8x128xf32>
    %101 = arith.mulf %93, %100 : vector<8x128xf32>
    %102 = arith.truncf %101 : vector<8x128xf32> to vector<8x128xbf16>
    %c0_41 = arith.constant 0 : index
    %c0_42 = arith.constant 0 : index
    %103 = vector.load %arg12[%c0_41, %c0_42] : memref<128x32xbf16, #tpu.memory_space<vmem>>, vector<128x32xbf16>
    %cst_43 = arith.constant dense<0.000000e+00> : vector<8x32xf32>
    %104 = tpu.matmul %102, %103, %cst_43 {dimension_numbers = #tpu.dot_dimension_numbers<[1], [0], [0], [1], [0, 0, 1, 1], [], []>} : vector<8x128xbf16>, vector<128x32xbf16>, vector<8x32xf32> -> vector<8x32xf32>
    %c0_44 = arith.constant 0 : index
    %c0_45 = arith.constant 0 : index
    %105 = vector.load %arg13[%c0_44, %c0_45] : memref<1x32xf32, #tpu.memory_space<vmem>>, vector<1x32xf32>
    %106 = vector.broadcast %105 : vector<1x32xf32> to vector<8x32xf32>
    %107 = arith.addf %104, %106 : vector<8x32xf32>
    %108 = arith.addf %65, %107 : vector<8x32xf32>
    %c0_46 = arith.constant 0 : index
    %c0_47 = arith.constant 0 : index
    %c0_48 = arith.constant 0 : index
    %109 = vector.load %arg14[%c0_46, %c0_47, %c0_48] : memref<1x8x32xf32, #tpu.memory_space<vmem>>, vector<1x8x32xf32>
    %110 = vector.shape_cast %109 : vector<1x8x32xf32> to vector<8x32xf32>
    %111 = vector.shape_cast %108 : vector<8x32xf32> to vector<1x8x32xf32>
    tpu.vector_store %arg14[%c0_46, %c0_47, %c0_48], %111 {strides = array<i32>} : memref<1x8x32xf32, #tpu.memory_space<vmem>>, vector<1x8x32xf32>,
    return
  }
  func.func @transform_0(%arg0: i32) -> (i32, i32, i32) {
    %c0_i32 = arith.constant 0 : i32
    %c0_i32_0 = arith.constant 0 : i32
    %c0_i32_1 = arith.constant 0 : i32
    return %arg0, %c0_i32, %c0_i32_0 : i32, i32, i32
  }
  func.func @transform_1(%arg0: i32) -> (i32, i32) {
    %c0_i32 = arith.constant 0 : i32
    %c0_i32_0 = arith.constant 0 : i32
    %c0_i32_1 = arith.constant 0 : i32
    return %c0_i32, %c0_i32_0 : i32, i32
  }
  func.func @transform_2(%arg0: i32) -> (i32, i32) {
    %c0_i32 = arith.constant 0 : i32
    %c0_i32_0 = arith.constant 0 : i32
    %c0_i32_1 = arith.constant 0 : i32
    return %c0_i32, %c0_i32_0 : i32, i32
  }
  func.func @transform_3(%arg0: i32) -> (i32, i32) {
    %c0_i32 = arith.constant 0 : i32
    %c0_i32_0 = arith.constant 0 : i32
    %c0_i32_1 = arith.constant 0 : i32
    return %c0_i32, %c0_i32_0 : i32, i32
  }
  func.func @transform_4(%arg0: i32) -> (i32, i32) {
    %c0_i32 = arith.constant 0 : i32
    %c0_i32_0 = arith.constant 0 : i32
    %c0_i32_1 = arith.constant 0 : i32
    return %c0_i32, %c0_i32_0 : i32, i32
  }
  func.func @transform_5(%arg0: i32) -> (i32, i32) {
    %c0_i32 = arith.constant 0 : i32
    %c0_i32_0 = arith.constant 0 : i32
    %c0_i32_1 = arith.constant 0 : i32
    return %c0_i32, %c0_i32_0 : i32, i32
  }
  func.func @transform_6(%arg0: i32) -> (i32, i32) {
    %c0_i32 = arith.constant 0 : i32
    %c0_i32_0 = arith.constant 0 : i32
    %c0_i32_1 = arith.constant 0 : i32
    return %c0_i32, %c0_i32_0 : i32, i32
  }
  func.func @transform_7(%arg0: i32) -> (i32, i32) {
    %c0_i32 = arith.constant 0 : i32
    %c0_i32_0 = arith.constant 0 : i32
    %c0_i32_1 = arith.constant 0 : i32
    return %c0_i32, %c0_i32_0 : i32, i32
  }
  func.func @transform_8(%arg0: i32) -> (i32, i32) {
    %c0_i32 = arith.constant 0 : i32
    %c0_i32_0 = arith.constant 0 : i32
    %c0_i32_1 = arith.constant 0 : i32
    return %c0_i32, %c0_i32_0 : i32, i32
  }
  func.func @transform_9(%arg0: i32) -> (i32, i32) {
    %c0_i32 = arith.constant 0 : i32
    %c0_i32_0 = arith.constant 0 : i32
    %c0_i32_1 = arith.constant 0 : i32
    return %c0_i32, %c0_i32_0 : i32, i32
  }
  func.func @transform_10(%arg0: i32) -> (i32, i32) {
    %c0_i32 = arith.constant 0 : i32
    %c0_i32_0 = arith.constant 0 : i32
    %c0_i32_1 = arith.constant 0 : i32
    return %c0_i32, %c0_i32_0 : i32, i32
  }
  func.func @transform_11(%arg0: i32) -> (i32, i32) {
    %c0_i32 = arith.constant 0 : i32
    %c0_i32_0 = arith.constant 0 : i32
    %c0_i32_1 = arith.constant 0 : i32
    return %c0_i32, %c0_i32_0 : i32, i32
  }
  func.func @transform_12(%arg0: i32) -> (i32, i32) {
    %c0_i32 = arith.constant 0 : i32
    %c0_i32_0 = arith.constant 0 : i32
    %c0_i32_1 = arith.constant 0 : i32
    return %c0_i32, %c0_i32_0 : i32, i32
  }
  func.func @transform_13(%arg0: i32) -> (i32, i32, i32) {
    %c0_i32 = arith.constant 0 : i32
    %c0_i32_0 = arith.constant 0 : i32
    %c0_i32_1 = arith.constant 0 : i32
    return %arg0, %c0_i32, %c0_i32_0 : i32, i32, i32
  }
}

</mosaic_0001>

<bundles_post_ra>
// kernel: transformer_forward.2
= control target key start
LH: loop header
LB: loop body
LE: loop exit
PB: predicated region body
PF: predicated region fallthrough
CT: control target
= control target key end

     0   :  { %s3867_s0 = inlined_call_operand.hbm [shape: f32[2,8,32], index: 0, kind: input, shape index: {}]   ;;  %s3868_s1 = inlined_call_operand.hbm [shape: f32[1,32], index: 1, kind: input, shape index: {}]   ;;  %s3869_s2 = inlined_call_operand.hbm [shape: f32[1,32], index: 2, kind: input, shape index: {}]   ;;  %s3870_s3 = inlined_call_operand.hbm [shape: bf16[32,96], index: 3, kind: input, shape index: {}]   ;;  %s3871_s4 = inlined_call_operand.hbm [shape: f32[1,96], index: 4, kind: input, shape index: {}]   ;;  %s3872_s5 = inlined_call_operand.hbm [shape: bf16[32,32], index: 5, kind: input, shape index: {}]   ;;  %s3873_s6 = inlined_call_operand.hbm [shape: f32[1,32], index: 6, kind: input, shape index: {}]   ;;  %s3874_s7 = inlined_call_operand.hbm [shape: f32[1,32], index: 7, kind: input, shape index: {}]   ;;  %s3875_s8 = inlined_call_operand.hbm [shape: f32[1,32], index: 8, kind: input, shape index: {}]   ;;  %s3876_s9 = inlined_call_operand.hbm [shape: bf16[32,128], index: 9, kind: input, shape index: {}]   ;;  %s3877_s10 = inlined_call_operand.hbm [shape: f32[1,128], index: 10, kind: input, shape index: {}]   ;;  %s3878_s11 = inlined_call_operand.hbm [shape: bf16[128,32], index: 11, kind: input, shape index: {}]   ;;  %s3879_s12 = inlined_call_operand.hbm [shape: f32[1,32], index: 12, kind: input, shape index: {}]   ;;  %s3880_s13 = inlined_call_operand.hbm [shape: f32[2,8,32], index: 13, kind: output, shape index: {}]  }
   0x1   :  { %3890 = sst [smem:[#allocation34_spill]] %s3867_s0 }
   0x2   :  { %3891 = sst [smem:[#allocation35_spill]] %s3868_s1 }
   0x3   :  { %3892 = sst [smem:[#allocation36_spill]] %s3869_s2 }
   0x4   :  { %3893 = sst [smem:[#allocation37_spill]] %s3870_s3 }
   0x5   :  { %3894 = sst [smem:[#allocation38_spill]] %s3880_s13 }
   0x6   :  { %18 = vsyncpa [#allocation3], 0 }
   0x7   :  { %20 = vsyncpa [#allocation3 + $0x1], 0 }
   0x8   :  { %21 = vsyncpa [#allocation6], 0 }
   0x9   :  { %22 = vsyncpa [#allocation9], 0 }
   0xa   :  { %23 = vsyncpa [#allocation12], 0 }
   0xb   :  { %24 = vsyncpa [#allocation15], 0 }
   0xc   :  { %25 = vsyncpa [#allocation18], 0 }
   0xd   :  { %26 = vsyncpa [#allocation21], 0 }
   0xe   :  { %27 = vsyncpa [#allocation4], 0 }
   0xf   :  { %29 = vsyncpa [#allocation4 + $0x1], 0  ;;  %s3210_s25 = smov 0   ;;  %s3212_s26 = smov 0  }
  0x10   :  { %s3214_s27 = smov 0   ;;  %s3216_s28 = smov 0  }
  0x11 LB: > { %s3112_s29 = smov [#allocation5]   ;;  %s3231_s14 = sadd.s32 4294967295, %s3110_s28   ;;  %s3110_s28 = sphi %s3216_s28, %s3933_s28   ;;  %s3106_s27 = sphi %s3214_s27, %s3932_s27   ;;  %s3102_s26 = sphi %s3212_s26, %s3931_s26   ;;  %s3098_s25 = sphi %s3210_s25, %s3930_s25  }
  0x12   : > { %s357_s30 = sshll.u32 %s3112_s29, 4  ;;  %3895 = sst [smem:[#allocation32_spill]] %s3231_s14  ;;  %s3236_s30 = int_to_ptr.vmem [resolvable:$true] %s357_s30 }
  0x13   : > { %p2232_p0 = scmp.ge.s32.totalorder %s3110_s28, 1  ;;  %p3887_p1 = scmp.eq.s32.totalorder %s3231_s14, 0 }
  0x14   : > { %p344_p2 = scmp.lt.s32.totalorder %s3110_s28, 3  ;;  %s3113_s16 = smov [#allocation8]  }
  0x15   : > { %s378_s17 = sshll.u32 %s3113_s16, 4  ;;  %s3114_s19 = smov [#allocation11]   ;;  %s3245_s17 = int_to_ptr.vmem [resolvable:$true] %s378_s17 }
  0x16   : > { %p3238_p3 = pnand %p2232_p0, %p344_p2  ;;  %s402_s20 = sshll.u32 %s3114_s19, 4  ;;  %s3253_s20 = int_to_ptr.vmem [resolvable:$true] %s402_s20 }
  0x17   : > { %s3899_s1 = sld [smem:[#allocation35_spill]] }
  0x18   : > { %s3896_s15 = scalar_select %p3238_p3, 1, 0 }
  0x19   : > { %p2487_p5 = pneg %p3238_p3 }
  0x1a   : > { %3897 = sst [smem:[#allocation33_spill]] %s3896_s15 }
  0x1b   : > { %p3249_p6 = pnand %p2487_p5, %p3887_p1 }
  0x1d   : > { %s2654_s23 = scalar_lea.hbm %s3899_s1, 16  ;;  %p3263_p8 = pneg %p3249_p6 }
  0x1e   : > { %p2655_p7 = scmp.ne.s32.totalorder %s3899_s1, %s2654_s23  ;;  %p2661_p11 = scmp.lt.u32.totalorder %s2654_s23, %s3899_s1 }
  0x20   : > { %p2657_p9 = pnand %p3263_p8, %p2655_p7 }
  0x22   : > { %p2658_p10 = pneg %p2657_p9 }
  0x24   : > { %p2663_p12 = pnand %p2661_p11, %p2658_p10 }
  0x26   : > { %2666 = shalt.err (!%p2663_p12)
}
  0x27   : > { %s2667_s21 = scalar_lea.vmem %s3236_s30, 16  ;;  %s2674_s22 = scalar_lea.vmem %s3236_s30, 32 }
  0x28   : > { %p2668_p13 = scmp.ne.s32.totalorder %s3236_s30, %s2667_s21  ;;  %p2675_p5 = scmp.lt.s32.totalorder %s3236_s30, %s3236_s30 }
  0x29   : > { %p2676_p7 = scmp.lt.s32.totalorder %s2674_s22, %s2667_s21 }
  0x2a   : > { %p2670_p0 = pnand %p2668_p13, %p3263_p8 }
  0x2b   : > { %p2677_p9 = por %p2676_p7, %p2675_p5 }
  0x2c   : > { %p2671_p2 = pneg %p2670_p0 }
  0x2e   : > { %p2678_p4 = pnand %p2677_p9, %p2671_p2 }
  0x30   : > { %2681 = shalt.err (!%p2678_p4)
}
  0x31   : > { %2490 = dma.hbm_to_vmem [thread:$0]  (!%p3249_p6), %s3899_s1, 16, %s3236_s30, [#allocation6]  }
  0x32   : > { %s3901_s3 = sld [smem:[#allocation37_spill]] }
  0x38   : > { %s2682_s19 = scalar_lea.hbm %s3901_s3, 256 }
  0x39   : > { %p2683_p10 = scmp.ne.s32.totalorder %s3901_s3, %s2682_s19  ;;  %p2689_p4 = scmp.lt.u32.totalorder %s2682_s19, %s3901_s3 }
  0x3b   : > { %p2685_p11 = pnand %p2683_p10, %p3263_p8 }
  0x3d   : > { %p2686_p12 = pneg %p2685_p11 }
  0x3f   : > { %p2691_p13 = pnand %p2689_p4, %p2686_p12 }
  0x41   : > { %2694 = shalt.err (!%p2691_p13)
}
  0x42   : > { %s2695_s30 = scalar_lea.vmem %s3245_s17, 256  ;;  %p2703_p7 = scmp.lt.s32.totalorder %s3245_s17, %s3245_s17 }
  0x43   : > { %p2696_p0 = scmp.ne.s32.totalorder %s3245_s17, %s2695_s30  ;;  %p2704_p9 = scmp.lt.s32.totalorder %s2695_s30, %s2695_s30 }
  0x45   : > { %p2698_p2 = pnand %p2696_p0, %p3263_p8  ;;  %p2705_p10 = por %p2704_p9, %p2703_p7 }
  0x47   : > { %p2699_p5 = pneg %p2698_p2 }
  0x49   : > { %p2706_p11 = pnand %p2705_p10, %p2699_p5 }
  0x4b   : > { %2709 = shalt.err (!%p2706_p11)
}
  0x4c   : > { %s3115_s0 = smov 64   ;;  %s3116_s15 = smov 4  }
  0x4d   : > { %2496 = dma.hbm_to_vmem [thread:$0]  (!%p3249_p6), %s3901_s3, 256, %s3245_s17, [#allocation9], %s3115_s0, %s3115_s0, %s3116_s15  }
  0x4e   : > { %s2710_s19 = scalar_lea.hbm %s3872_s5, 256 }
  0x4f   : > { %p2711_p12 = scmp.ne.s32.totalorder %s3872_s5, %s2710_s19  ;;  %p2717_p0 = scmp.lt.u32.totalorder %s2710_s19, %s3872_s5 }
  0x51   : > { %p2713_p4 = pnand %p2711_p12, %p3263_p8 }
  0x53   : > { %p2714_p13 = pneg %p2713_p4 }
  0x55   : > { %p2719_p2 = pnand %p2717_p0, %p2714_p13 }
  0x57   : > { %2722 = shalt.err (!%p2719_p2)
}
  0x58   : > { %s2723_s17 = scalar_lea.vmem %s3253_s20, 256  ;;  %p2731_p10 = scmp.lt.s32.totalorder %s3253_s20, %s3253_s20 }
  0x59   : > { %p2724_p5 = scmp.ne.s32.totalorder %s3253_s20, %s2723_s17  ;;  %p2732_p11 = scmp.lt.s32.totalorder %s2723_s17, %s2723_s17 }
  0x5b   : > { %p2726_p7 = pnand %p2724_p5, %p3263_p8  ;;  %p2733_p12 = por %p2732_p11, %p2731_p10 }
  0x5d   : > { %p2727_p9 = pneg %p2726_p7 }
  0x5f   : > { %p2734_p4 = pnand %p2733_p12, %p2727_p9 }
  0x61   : > { %2737 = shalt.err (!%p2734_p4)
}
  0x62   : > { %2502 = dma.hbm_to_vmem [thread:$0]  (!%p3249_p6), %s3872_s5, 256, %s3253_s20, [#allocation12], %s3115_s0, %s3115_s0, %s3116_s15  }
  0x63   : > { %s3117_s23 = smov [#allocation14]   ;;  %s3118_s29 = smov [#allocation17]  }
  0x64   : > { %s427_s24 = sshll.u32 %s3117_s23, 4  ;;  %s448_s19 = sshll.u32 %s3118_s29, 4  ;;  %s428_s24 = int_to_ptr.vmem [resolvable:$true] %s427_s24  ;;  %s449_s19 = int_to_ptr.vmem [resolvable:$true] %s448_s19 }
  0x65   : > { %s2738_s30 = scalar_lea.hbm %s3874_s7, 16 }
  0x66   : > { %p2739_p13 = scmp.ne.s32.totalorder %s3874_s7, %s2738_s30  ;;  %p2745_p5 = scmp.lt.u32.totalorder %s2738_s30, %s3874_s7 }
  0x68   : > { %p2741_p0 = pnand %p2739_p13, %p3263_p8 }
  0x6a   : > { %p2742_p2 = pneg %p2741_p0 }
  0x6c   : > { %p2747_p7 = pnand %p2745_p5, %p2742_p2 }
  0x6e   : > { %2750 = shalt.err (!%p2747_p7)
}
  0x6f   : > { %s2751_s20 = scalar_lea.vmem %s428_s24, 16  ;;  %s2758_s13 = scalar_lea.vmem %s428_s24, 32 }
  0x70   : > { %p2752_p9 = scmp.ne.s32.totalorder %s428_s24, %s2751_s20  ;;  %p2759_p12 = scmp.lt.s32.totalorder %s428_s24, %s428_s24 }
  0x71   : > { %p2760_p4 = scmp.lt.s32.totalorder %s2758_s13, %s2751_s20 }
  0x72   : > { %p2754_p10 = pnand %p2752_p9, %p3263_p8 }
  0x73   : > { %p2761_p1 = por %p2760_p4, %p2759_p12 }
  0x74   : > { %p2755_p11 = pneg %p2754_p10 }
  0x76   : > { %p2762_p3 = pnand %p2761_p1, %p2755_p11 }
  0x78   : > { %2765 = shalt.err (!%p2762_p3)
}
  0x79   : > { %2508 = dma.hbm_to_vmem [thread:$0]  (!%p3249_p6), %s3874_s7, 16, %s428_s24, [#allocation15]  }
  0x7a   : > { %s2766_s21 = scalar_lea.hbm %s3876_s9, 256 }
  0x7b   : > { %p2767_p13 = scmp.ne.s32.totalorder %s3876_s9, %s2766_s21  ;;  %p2773_p3 = scmp.lt.u32.totalorder %s2766_s21, %s3876_s9 }
  0x7d   : > { %p2769_p0 = pnand %p2767_p13, %p3263_p8 }
  0x7f   : > { %p2770_p1 = pneg %p2769_p0 }
  0x81   : > { %p2775_p2 = pnand %p2773_p3, %p2770_p1 }
  0x83   : > { %2778 = shalt.err (!%p2775_p2)
}
  0x84   : > { %s2779_s20 = scalar_lea.vmem %s449_s19, 256  ;;  %p2787_p10 = scmp.lt.s32.totalorder %s449_s19, %s449_s19 }
  0x85   : > { %p2780_p5 = scmp.ne.s32.totalorder %s449_s19, %s2779_s20  ;;  %p2788_p11 = scmp.lt.s32.totalorder %s2779_s20, %s2779_s20 }
  0x87   : > { %p2782_p7 = pnand %p2780_p5, %p3263_p8  ;;  %p2789_p12 = por %p2788_p11, %p2787_p10 }
  0x89   : > { %p2783_p9 = pneg %p2782_p7 }
  0x8b   : > { %p2790_p4 = pnand %p2789_p12, %p2783_p9 }
  0x8d   : > { %2793 = shalt.err (!%p2790_p4)
}
  0x8e   : > { %2514 = dma.hbm_to_vmem [thread:$0]  (!%p3249_p6), %s3876_s9, 256, %s449_s19, [#allocation18], %s3115_s0, %s3115_s0, %s3116_s15  }
  0x8f   : > { %s3119_s3 = smov [#allocation20]   ;;  %s3120_s14 = smov [#allocation7]  }
  0x90   : > { %s472_s23 = sshll.u32 %s3119_s3, 4  ;;  %s368_s29 = sshll.u32 %s3120_s14, 4  ;;  %s473_s23 = int_to_ptr.vmem [resolvable:$true] %s472_s23  ;;  %s369_s29 = int_to_ptr.vmem [resolvable:$true] %s368_s29 }
  0x91   : > { %s2794_s30 = scalar_lea.hbm %s3878_s11, 1024 }
  0x92   : > { %p2795_p13 = scmp.ne.s32.totalorder %s3878_s11, %s2794_s30  ;;  %p2801_p3 = scmp.lt.u32.totalorder %s2794_s30, %s3878_s11 }
  0x94   : > { %p2797_p0 = pnand %p2795_p13, %p3263_p8 }
  0x96   : > { %p2798_p1 = pneg %p2797_p0 }
  0x98   : > { %p2803_p2 = pnand %p2801_p3, %p2798_p1 }
  0x9a   : > { %2806 = shalt.err (!%p2803_p2)
}
  0x9b   : > { %s2807_s19 = scalar_lea.vmem %s473_s23, 1024  ;;  %p2815_p10 = scmp.lt.s32.totalorder %s473_s23, %s473_s23 }
  0x9c   : > { %p2808_p5 = scmp.ne.s32.totalorder %s473_s23, %s2807_s19  ;;  %p2816_p11 = scmp.lt.s32.totalorder %s2807_s19, %s2807_s19 }
  0x9e   : > { %p2810_p7 = pnand %p2808_p5, %p3263_p8  ;;  %p2817_p12 = por %p2816_p11, %p2815_p10 }
  0xa0   : > { %p2811_p9 = pneg %p2810_p7 }
  0xa2   : > { %p2818_p4 = pnand %p2817_p12, %p2811_p9 }
  0xa4   : > { %2821 = shalt.err (!%p2818_p4)
}
  0xa5   : > { %2520 = dma.hbm_to_vmem [thread:$0]  (!%p3249_p6), %s3878_s11, 1024, %s473_s23, [#allocation21], %s3115_s0, %s3115_s0, %s3116_s15  }
  0xa6   : > { %s3902_s2 = sld [smem:[#allocation36_spill]] }
  0xac   : > { %s2822_s22 = scalar_lea.hbm %s3902_s2, 16 }
  0xad   : > { %p2823_p13 = scmp.ne.s32.totalorder %s3902_s2, %s2822_s22  ;;  %p2829_p3 = scmp.lt.u32.totalorder %s2822_s22, %s3902_s2 }
  0xaf   : > { %p2825_p0 = pnand %p2823_p13, %p3263_p8 }
  0xb1   : > { %p2826_p1 = pneg %p2825_p0 }
  0xb3   : > { %p2831_p2 = pnand %p2829_p3, %p2826_p1 }
  0xb5   : > { %2834 = shalt.err (!%p2831_p2)
}
  0xb6   : > { %s2835_s24 = scalar_lea.vmem %s369_s29, 16  ;;  %s2842_s0 = scalar_lea.vmem %s369_s29, 32 }
  0xb7   : > { %p2836_p5 = scmp.ne.s32.totalorder %s369_s29, %s2835_s24  ;;  %p2843_p10 = scmp.lt.s32.totalorder %s369_s29, %s369_s29 }
  0xb8   : > { %p2844_p11 = scmp.lt.s32.totalorder %s2842_s0, %s2835_s24 }
  0xb9   : > { %p2838_p7 = pnand %p2836_p5, %p3263_p8 }
  0xba   : > { %p2845_p12 = por %p2844_p11, %p2843_p10 }
  0xbb   : > { %p2839_p9 = pneg %p2838_p7 }
  0xbd   : > { %p2846_p4 = pnand %p2845_p12, %p2839_p9 }
  0xbf   : > { %2849 = shalt.err (!%p2846_p4)
}
  0xc0   : > { %2493 = dma.hbm_to_vmem [thread:$0]  (!%p3249_p6), %s3902_s2, 16, %s369_s29, [#allocation6]  }
  0xc1   : > { %s3121_s19 = smov [#allocation10]   ;;  %s3122_s3 = smov [#allocation13]  }
  0xc2   : > { %s392_s13 = sshll.u32 %s3121_s19, 4  ;;  %s416_s14 = sshll.u32 %s3122_s3, 4  ;;  %s393_s13 = int_to_ptr.vmem [resolvable:$true] %s392_s13  ;;  %s417_s14 = int_to_ptr.vmem [resolvable:$true] %s416_s14 }
  0xc3   : > { %s2850_s30 = scalar_lea.hbm %s3871_s4, 16 }
  0xc4   : > { %p2851_p13 = scmp.ne.s32.totalorder %s3871_s4, %s2850_s30  ;;  %p2857_p3 = scmp.lt.u32.totalorder %s2850_s30, %s3871_s4 }
  0xc6   : > { %p2853_p0 = pnand %p2851_p13, %p3263_p8 }
  0xc8   : > { %p2854_p1 = pneg %p2853_p0 }
  0xca   : > { %p2859_p2 = pnand %p2857_p3, %p2854_p1 }
  0xcc   : > { %2862 = shalt.err (!%p2859_p2)
}
  0xcd   : > { %s2863_s29 = scalar_lea.vmem %s393_s13, 16  ;;  %s2870_s0 = scalar_lea.vmem %s393_s13, 32 }
  0xce   : > { %p2864_p5 = scmp.ne.s32.totalorder %s393_s13, %s2863_s29  ;;  %p2871_p10 = scmp.lt.s32.totalorder %s393_s13, %s393_s13 }
  0xcf   : > { %p2872_p11 = scmp.lt.s32.totalorder %s2870_s0, %s2863_s29 }
  0xd0   : > { %p2866_p7 = pnand %p2864_p5, %p3263_p8 }
  0xd1   : > { %p2873_p12 = por %p2872_p11, %p2871_p10 }
  0xd2   : > { %p2867_p9 = pneg %p2866_p7 }
  0xd4   : > { %p2874_p4 = pnand %p2873_p12, %p2867_p9 }
  0xd6   : > { %2877 = shalt.err (!%p2874_p4)
}
  0xd7   : > { %2499 = dma.hbm_to_vmem [thread:$0]  (!%p3249_p6), %s3871_s4, 16, %s393_s13, [#allocation9]  }
  0xd8   : > { %s2878_s21 = scalar_lea.hbm %s3873_s6, 16 }
  0xd9   : > { %p2879_p13 = scmp.ne.s32.totalorder %s3873_s6, %s2878_s21  ;;  %p2885_p3 = scmp.lt.u32.totalorder %s2878_s21, %s3873_s6 }
  0xdb   : > { %p2881_p0 = pnand %p2879_p13, %p3263_p8 }
  0xdd   : > { %p2882_p1 = pneg %p2881_p0 }
  0xdf   : > { %p2887_p2 = pnand %p2885_p3, %p2882_p1 }
  0xe1   : > { %2890 = shalt.err (!%p2887_p2)
}
  0xe2   : > { %s2891_s20 = scalar_lea.vmem %s417_s14, 16  ;;  %s2898_s13 = scalar_lea.vmem %s417_s14, 32 }
  0xe3   : > { %p2892_p5 = scmp.ne.s32.totalorder %s417_s14, %s2891_s20  ;;  %p2899_p10 = scmp.lt.s32.totalorder %s417_s14, %s417_s14 }
  0xe4   : > { %p2900_p11 = scmp.lt.s32.totalorder %s2898_s13, %s2891_s20 }
  0xe5   : > { %p2894_p7 = pnand %p2892_p5, %p3263_p8 }
  0xe6   : > { %p2901_p12 = por %p2900_p11, %p2899_p10 }
  0xe7   : > { %p2895_p9 = pneg %p2894_p7 }
  0xe9   : > { %p2902_p4 = pnand %p2901_p12, %p2895_p9 }
  0xeb   : > { %2905 = shalt.err (!%p2902_p4)
}
  0xec   : > { %2505 = dma.hbm_to_vmem [thread:$0]  (!%p3249_p6), %s3873_s6, 16, %s417_s14, [#allocation12]  }
  0xed   : > { %s3123_s0 = smov [#allocation16]   ;;  %s3124_s23 = smov [#allocation19]  }
  0xee   : > { %s438_s15 = sshll.u32 %s3123_s0, 4  ;;  %s462_s19 = sshll.u32 %s3124_s23, 4  ;;  %s439_s15 = int_to_ptr.vmem [resolvable:$true] %s438_s15  ;;  %s463_s19 = int_to_ptr.vmem [resolvable:$true] %s462_s19 }
  0xef   : > { %s2906_s22 = scalar_lea.hbm %s3875_s8, 16 }
  0xf0   : > { %p2907_p13 = scmp.ne.s32.totalorder %s3875_s8, %s2906_s22  ;;  %p2913_p3 = scmp.lt.u32.totalorder %s2906_s22, %s3875_s8 }
  0xf2   : > { %p2909_p0 = pnand %p2907_p13, %p3263_p8 }
  0xf4   : > { %p2910_p1 = pneg %p2909_p0 }
  0xf6   : > { %p2915_p2 = pnand %p2913_p3, %p2910_p1 }
  0xf8   : > { %2918 = shalt.err (!%p2915_p2)
}
  0xf9   : > { %s2919_s14 = scalar_lea.vmem %s439_s15, 16  ;;  %s2926_s13 = scalar_lea.vmem %s439_s15, 32 }
  0xfa   : > { %p2920_p5 = scmp.ne.s32.totalorder %s439_s15, %s2919_s14  ;;  %p2927_p10 = scmp.lt.s32.totalorder %s439_s15, %s439_s15 }
  0xfb   : > { %p2928_p11 = scmp.lt.s32.totalorder %s2926_s13, %s2919_s14 }
  0xfc   : > { %p2922_p7 = pnand %p2920_p5, %p3263_p8 }
  0xfd   : > { %p2929_p12 = por %p2928_p11, %p2927_p10 }
  0xfe   : > { %p2923_p9 = pneg %p2922_p7 }
 0x100   : > { %p2930_p4 = pnand %p2929_p12, %p2923_p9 }
 0x102   : > { %2933 = shalt.err (!%p2930_p4)
}
 0x103   : > { %2511 = dma.hbm_to_vmem [thread:$0]  (!%p3249_p6), %s3875_s8, 16, %s439_s15, [#allocation15]  }
 0x104   : > { %s2934_s3 = scalar_lea.hbm %s3877_s10, 16 }
 0x105   : > { %p2935_p13 = scmp.ne.s32.totalorder %s3877_s10, %s2934_s3  ;;  %p2941_p3 = scmp.lt.u32.totalorder %s2934_s3, %s3877_s10 }
 0x107   : > { %p2937_p0 = pnand %p2935_p13, %p3263_p8 }
 0x109   : > { %p2938_p1 = pneg %p2937_p0 }
 0x10b   : > { %p2943_p2 = pnand %p2941_p3, %p2938_p1 }
 0x10d   : > { %2946 = shalt.err (!%p2943_p2)
}
 0x10e   : > { %s2947_s1 = scalar_lea.vmem %s463_s19, 16  ;;  %s2954_s15 = scalar_lea.vmem %s463_s19, 32 }
 0x10f   : > { %p2948_p5 = scmp.ne.s32.totalorder %s463_s19, %s2947_s1  ;;  %p2955_p10 = scmp.lt.s32.totalorder %s463_s19, %s463_s19 }
 0x110   : > { %p2956_p11 = scmp.lt.s32.totalorder %s2954_s15, %s2947_s1 }
 0x111   : > { %p2950_p7 = pnand %p2948_p5, %p3263_p8 }
 0x112   : > { %p2957_p12 = por %p2956_p11, %p2955_p10 }
 0x113   : > { %p2951_p9 = pneg %p2950_p7 }
 0x115   : > { %p2958_p4 = pnand %p2957_p12, %p2951_p9 }
 0x117   : > { %2961 = shalt.err (!%p2958_p4)
}
 0x118   : > { %2517 = dma.hbm_to_vmem [thread:$0]  (!%p3249_p6), %s3877_s10, 16, %s463_s19, [#allocation18]  }
 0x119   : > { %s3125_s13 = smov [#allocation22]   ;;  %s2962_s23 = scalar_lea.hbm %s3879_s12, 16 }
 0x11a   : > { %s486_s24 = sshll.u32 %s3125_s13, 4  ;;  %p2963_p13 = scmp.ne.s32.totalorder %s3879_s12, %s2962_s23  ;;  %s487_s24 = int_to_ptr.vmem [resolvable:$true] %s486_s24 }
 0x11b   : > { %p2969_p3 = scmp.lt.u32.totalorder %s2962_s23, %s3879_s12 }
 0x11c   : > { %p2965_p0 = pnand %p2963_p13, %p3263_p8 }
 0x11e   : > { %p2966_p1 = pneg %p2965_p0 }
 0x120   : > { %p2971_p2 = pnand %p2969_p3, %p2966_p1 }
 0x122   : > { %2974 = shalt.err (!%p2971_p2)
}
 0x123   : > { %s2975_s19 = scalar_lea.vmem %s487_s24, 16  ;;  %s2982_s17 = scalar_lea.vmem %s487_s24, 32 }
 0x124   : > { %p2976_p5 = scmp.ne.s32.totalorder %s487_s24, %s2975_s19  ;;  %p2983_p10 = scmp.lt.s32.totalorder %s487_s24, %s487_s24 }
 0x125   : > { %p2984_p11 = scmp.lt.s32.totalorder %s2982_s17, %s2975_s19 }
 0x126   : > { %p2978_p7 = pnand %p2976_p5, %p3263_p8 }
 0x127   : > { %p2985_p12 = por %p2984_p11, %p2983_p10 }
 0x128   : > { %p2979_p9 = pneg %p2978_p7 }
 0x12a   : > { %p2986_p4 = pnand %p2985_p12, %p2979_p9 }
 0x12c   : > { %2989 = shalt.err (!%p2986_p4)
}
 0x12d   : > { %s3903_s16 = sld [smem:[#allocation32_spill]]  ;;  %s2231_s20 = sadd.s32 4294967294, %s3110_s28  }
 0x12e   : > { %2523 = dma.hbm_to_vmem [thread:$0]  (!%p3249_p6), %s3879_s12, 16, %s487_s24, [#allocation21]  }
 0x12f   : > { %s3507_s18 = sadd.s32 1, %s3110_s28   ;;  %s42_s13 = sadd.s32 1, %s3106_s27 }
 0x130   : > { %s39_s14 = ssub.s32 %s3110_s28, %s3507_s18  ;;  %p49_p13 = scmp.ne.s32.totalorder %s3106_s27, %s3102_s26 }
 0x131   : > { %p40_p8 = scmp.eq.s32.totalorder %s39_s14, 0  ;;  %p50_p0 = scmp.eq.s32.totalorder %s3110_s28, 0 }
 0x132   : > { %p55_p1 = scmp.ne.s32.totalorder %s3102_s26, %s3098_s25  ;;  %p337_p7 = scmp.eq.s32.totalorder %s2231_s20, 1 }
 0x133   : > { %s3518_s29 = scalar_select %p40_p8, %s3106_s27, %s42_s13  }
 0x134   : > { %p3520_p3 = por %p50_p0, %p49_p13  ;;  %p3905_p2 = scmp.eq.s32.totalorder %s3903_s16, 0 }
 0x135   : > { %p331_p5 = scmp.eq.s32.totalorder %s3903_s16, 1  ;;  %p2544_p9 = scmp.lt.s32.totalorder %s3110_s28, 2 }
 0x136   : > { %p3526_p6 = por %p3905_p2, %p55_p1  ;;  %s497_s23 = sand.u32 1, %s3106_s27  }
 0x137   : > { %p3533_p10 = por %p331_p5, %p49_p13  ;;  %p3537_p11 = por %p337_p7, %p55_p1 }
 0x138   : > { %s2246_s22 = sshll.u32 %s497_s23, 3  ;;  %s2247_s30 = sshll.u32 %s3110_s28, 7 }
 0x139   : > { %s3907_s3 = scalar_select %p3533_p10, 1, 0 }
 0x13a   : > { %s3908_s21 = scalar_select %p3537_p11, 1, 0 }
 0x13b   : > { %s3909_s1 = sld [smem:[#allocation34_spill]]  ;;  %s501_s16 = scalar_lea.vmem [#allocation2], %s2246_s22 }
 0x13c   : > { %s508_s20 = sshll.u32 %s501_s16, 4  ;;  %p3551_p12 = pnand %p2544_p9, %p3520_p3  ;;  %s3547_s20 = int_to_ptr.vmem [resolvable:$true] %s508_s20 }
 0x13d   : > { %s498_s13 = scalar_lea.sflag [#allocation3], %s497_s23 }
 0x13e   : > { %p2992_p8 = pneg %p3551_p12 }
 0x141   : > { %s3545_s15 = scalar_lea.hbm %s3909_s1, %s2247_s30  ;;  %s2995_s19 = scalar_lea.hbm %s3909_s1, 256 }
 0x142   : > { %s2990_s2 = scalar_lea.hbm %s3545_s15, 128  ;;  %p2996_p1 = scmp.lt.u32.totalorder %s3545_s15, %s3909_s1 }
 0x143   : > { %p2991_p4 = scmp.ne.s32.totalorder %s3545_s15, %s2990_s2  ;;  %p2997_p3 = scmp.lt.u32.totalorder %s2995_s19, %s2990_s2 }
 0x144   : > { %p2999_p5 = scmp.lt.u32.totalorder %s2990_s2, %s3545_s15 }
 0x145   : > { %p2993_p13 = pnand %p2992_p8, %p2991_p4  ;;  %p2998_p2 = por %p2997_p3, %p2996_p1 }
 0x147   : > { %p2994_p0 = pneg %p2993_p13  ;;  %p3000_p7 = por %p2999_p5, %p2998_p2 }
 0x149   : > { %p3001_p9 = pnand %p3000_p7, %p2994_p0 }
 0x14b   : > { %3004 = shalt.err (!%p3001_p9)
}
 0x14c   : > { %s3005_s23 = scalar_lea.vmem %s3547_s20, 128  ;;  %s3126_s16 = smov [#allocation2]  }
 0x14d   : > { %p3006_p4 = scmp.ne.s32.totalorder %s3547_s20, %s3005_s23  ;;  %s3010_s22 = sshll.u32 %s3126_s16, 4  ;;  %s3011_s22 = int_to_ptr.vmem [resolvable:$false] %s3010_s22 }
 0x14e   : > { %s3012_s30 = scalar_lea.vmem %s3011_s22, 256  ;;  %p3013_p10 = scmp.lt.s32.totalorder %s3547_s20, %s3011_s22 }
 0x14f   : > { %p3008_p13 = pnand %p3006_p4, %p2992_p8  ;;  %p3014_p1 = scmp.lt.s32.totalorder %s3012_s30, %s3005_s23 }
 0x151   : > { %p3009_p11 = pneg %p3008_p13  ;;  %p3015_p3 = por %p3014_p1, %p3013_p10 }
 0x153   : > { %p3016_p2 = pnand %p3015_p3, %p3009_p11 }
 0x155   : > { %3019 = shalt.err (!%p3016_p2)
}
 0x156   : > { %2527 = dma.hbm_to_vmem [thread:$0]  (!%p3551_p12), %s3545_s15, 128, %s3547_s20, %s498_s13  }
 0x157   : > { %s3911_s2 = sld [smem:[#allocation33_spill]] }
 0x15d   : > { %p3912_p0 = scmp.ne.s32.totalorder %s3911_s2, 0 }
 0x15e   : > { %s3583_s19 = sand.u32 (!%p3912_p0), 1, %s3102_s26  }
 0x15f   : > { %517 = sbr.rel (%p3912_p0) target bundleno = 3129 (0xc39), region = 72  ;;  %s2249_s0 = sshll.u32 (!%p3912_p0), %s3583_s19, 3 }
 0x160   : > { %s520_s17 = scalar_lea.sflag (!%p3912_p0), [#allocation3], %s3583_s19  ;;  %s523_s23 = scalar_lea.vmem (!%p3912_p0), [#allocation2], %s2249_s0 }
 0x166   : > { %3065 = dma.done.wait (%p3526_p6), %s520_s17, 128  }
 0x167   : > { %3067 = vsyncadd (%p3526_p6), %s520_s17, 4294967168  ;;  %s3913_s15 = sld [smem:[#allocation32_spill]] }
 0x16d   : > { %p3914_p10 = scmp.eq.s32.totalorder %s3913_s15, 0 }
 0x16f   : > { %3069 = dma.done.wait (%p3914_p10), [#allocation6], 32   ;;  %p3915_p11 = pmov %p3914_p10 }
 0x170   : > { %p3916_p12 = pmov %p3914_p10 }
 0x171   : > { %3071 = vsyncadd (%p3915_p11), [#allocation6], 4294967264 }
 0x172   : > { %3073 = dma.done.wait (%p3916_p12), [#allocation9], 272   ;;  %p3917_p8 = pmov %p3914_p10 }
 0x174   : > { %3075 = vsyncadd (%p3917_p8), [#allocation9], 4294967024  ;;  %p3918_p5 = pmov %p3917_p8 }
 0x176   : > { %3077 = dma.done.wait (%p3918_p5), [#allocation12], 272   ;;  %p3919_p7 = pmov %p3918_p5 }
 0x177   : > { %p3920_p6 = pmov %p3918_p5 }
 0x178   : > { %3079 = vsyncadd (%p3919_p7), [#allocation12], 4294967024 }
 0x179   : > { %3081 = dma.done.wait (%p3920_p6), [#allocation15], 32   ;;  %p3921_p9 = pmov %p3918_p5 }
 0x17a   : > { %p3922_p4 = pmov %p3918_p5 }
 0x17b   : > { %3083 = vsyncadd (%p3921_p9), [#allocation15], 4294967264 }
 0x17c   : > { %3085 = dma.done.wait (%p3922_p4), [#allocation18], 272   ;;  %p3923_p13 = pmov %p3922_p4 }
 0x17d   : > { %p3924_p1 = pmov %p3922_p4 }
 0x17e   : > { %3087 = vsyncadd (%p3923_p13), [#allocation18], 4294967024 }
 0x17f   : > { %3089 = dma.done.wait (%p3924_p1), [#allocation21], 1040   ;;  %p3925_p3 = pmov %p3924_p1 }
 0x180   : > { %vm618_vm0 = vcmask 261120   ;;  %v3617_v0 = vld [vmem:[%s523_s23] sm:$0xff]  ;;  %v2616_v7 = vld [vmem:[#allocation8] sm:$0xff]   ;;  %v3127_v8 = vmov 0.0   ;;  %vm3128_vm1 = vmmov 0   ;;  %s3129_s24 = smov 104   ;;  %v730_v33 = vlaneseq }
 0x181   : > { %3091 = vsyncadd (%p3925_p3), [#allocation21], 4294966256  ;;  %v619_v1 = vsel %vm618_vm0, %v3617_v0, 0.0  ;;  %2343 = vmatprep.subr.bf16.mxu0 %v3127_v8  ;;  %2347 = vmatprep.mubr.msk.bf16.mxu0 %vm3128_vm1, %v3127_v8  ;;  %v2617_v9 = vld [vmem:[#allocation8 + $0x8] sm:$0xff]   ;;  %v2263_v14 = vld [vmem:[#allocation5] ss:$0 sm:$0xff] }
 0x182   : > { %620 = vadd.xlane.f32.xlu0 %v619_v1  ;;  %2344 = vmatpush3.bf16.msra.mxu0 %v2616_v7  ;;  %v2264_v16 = vld [vmem:[#allocation7] ss:$0 sm:$0xff]  ;;  %v2265_v20 = vld [vmem:[#allocation10] ss:$0 sm:$0xff]  ;;  %s3130_s20 = smov 120   ;;  %s3131_s14 = smov 112  }
 0x183   : > { %2363 = vmatprep.subr.bf16.mxu1 %v3127_v8  ;;  %2345 = vmatprep.subr.bf16.mxu0 %v3127_v8  ;;  %s3132_s13 = smov 96   ;;  %v3133_v31 = vmov 1983009808   ;;  %v3134_v35 = vmov 1934713408   ;;  %v731_v38 = vshrl.u32 %v730_v33, 7 }
 0x184   : > { %2365 = vmatprep.mubr.msk.bf16.mxu1 %vm3128_vm1, %v3127_v8  ;;  %v728_v32 = vunpack.c.l.s4 %v3133_v31  ;;  %v760_v36 = vunpack.c.l.s4 %v3134_v35  ;;  %vm1176_vm2 = vcmask 64512   ;;  %s3135_s16 = smov 64   ;;  %vm1412_vm3 = vcmask 1043456   ;;  %s3136_s22 = smov 16  }
 0x185   : > { %s3137_s30 = smov 8   ;;  %s3138_s2 = smov 24   ;;  %vm1743_vm4 = vcmask 130048   ;;  %vm1745_vm5 = vcmask 195584  }
 0x186   : > { %2346 = vmatpush3.bf16.msra.mxu0 %v2617_v9  ;;  %v729_v37 = vunpack.c.0.s8 %v728_v32  ;;  %v761_v40 = vunpack.c.0.s8 %v760_v36  ;;  %s2306_s17 = sshll.u32 %s3913_s15, 7  ;;  %s613_s23 = scalar_lea.vmem [#allocation23], %s2249_s0 }
 0x187   : > { %2351 = vmatprep.subr.bf16.mxu0 %v3127_v8  ;;  %s2034_s0 = scalar_lea.sflag [#allocation4], %s3583_s19  ;;  %p3927_p0 = scmp.ne.s32.totalorder %s3907_s3, 0 }
 0x188   : > { %v3655_v41 = vsub.s32 %v729_v37, %v731_v38  ;;  %v3657_v47 = vsub.s32 %v761_v40, %v731_v38 }
 0x20f   : > { %v621_v2 = vpop.xlane.xlu0 %620 }
 0x210   : > { %v623_v3 = vmul.f32 0.03125, %v621_v2 }
 0x212   : > { %v624_v4 = vsub.f32 %v3617_v0, %v623_v3 }
 0x214   : > { %v625_v5 = vmul.f32 %v624_v4, %v624_v4 }
 0x216   : > { %v626_v6 = vsel %vm618_vm0, %v625_v5, 0.0 }
 0x217   : > { %627 = vadd.xlane.f32.xlu0 %v626_v6 }
 0x2a4   : > { %v628_v10 = vpop.xlane.xlu0 %627 }
 0x2a5   : > { %v629_v11 = vmul.f32 0.03125, %v628_v10 }
 0x2a7   : > { %v630_v12 = vadd.f32 1e-05, %v629_v11 }
 0x2a9   : > { %2630 = vrsqrt.f32 %v630_v12 }
 0x2b3   : > { %v2631_v13 = vpop.eup %2630 }
 0x2b4   : > { %v632_v15 = vmul.f32 %v2631_v13, %v624_v4 }
 0x2b6   : > { %v639_v17 = vmul.f32 %v2263_v14, %v632_v15 }
 0x2b8   : > { %v646_v18 = vadd.f32 %v2264_v16, %v639_v17 }
 0x2ba   : > { %v647_v19 = vpack.c.bf16 %v646_v18, %v646_v18 }
 0x2bc   : > { %2348 = vmatmul.mubr.msk.bf16.vlgmr.msra.gmra.mrb[0].mxu0 %vm618_vm0, %v647_v19 }
 0x2bd   : > { %2353 = vmatprep.mubr.msk.bf16.mxu0 %vm3128_vm1, %v3127_v8 }
 0x38f   : > { %v708_v21 = vpop.f32.mrb[0].mxu0 }
 0x390   : > { %v3634_v22 = vadd.f32 %v2265_v20, %v708_v21  ;;  %v2349_v23 = vpop.f32.mrb[1].mxu0 }
 0x391   : > { %v711_v24 = vpop.f32.mrb[2].mxu0 }
 0x392   : > { %798 = vrot.lane.b32.xlu0 %v3634_v22, %s3129_s24  ;;  %794 = vrot.lane.b32.xlu1 %v3634_v22, %s3130_s20  ;;  %v2350_v25 = vpop.f32.mrb[3].mxu0  ;;  %v3639_v26 = vmul.f32 0.35355338, %v3634_v22 }
 0x396   : > { %796 = vrot.lane.b32.xlu1 %v3634_v22, %s3131_s14  ;;  %722 = vrot.lane.b32.xlu0 %v3639_v26, %s3129_s24  ;;  %s2047_s24 = sshll.u32 %s613_s23, 4  ;;  %s3824_s24 = int_to_ptr.vmem [resolvable:$true] %s2047_s24 }
 0x397   : > { %s3020_s15 = scalar_lea.vmem %s3824_s24, 128 }
 0x398   : > { %p3021_p2 = scmp.ne.s32.totalorder %s3824_s24, %s3020_s15 }
 0x39a   : > { %800 = vrot.lane.b32.xlu1 %v3634_v22, %s3132_s13  ;;  %p3022_p10 = pnand %p3021_p2, %p3927_p0 }
 0x39c   : > { %p3023_p11 = pneg %p3022_p10 }
 0x404   : > { %v3644_v27 = vpop.permute.xlu1 %794  ;;  %v3650_v29 = vpop.permute.xlu0 %798 }
 0x405   : > { %802 = vrot.lane.b32.xlu1 %v3644_v27, %s3132_s13 }
 0x408   : > { %v3647_v28 = vpop.permute.xlu1 %796  ;;  %v723_v57 = vpop.permute.xlu0 %722 }
 0x409   : > { %804 = vrot.lane.b32.xlu1 %v3647_v28, %s3132_s13 }
 0x40c   : > { %v801_v30 = vpop.permute.xlu1 %800 }
 0x40d   : > { %806 = vrot.lane.b32.xlu1 %v3650_v29, %s3132_s13  ;;  %s3926_s13 = sld [smem:[#allocation38_spill]] }
 0x411   : > { %716 = vrot.lane.b32.xlu1 %v3639_v26, %s3130_s20 }
 0x415   : > { %719 = vrot.lane.b32.xlu1 %v3639_v26, %s3131_s14 }
 0x477   : > { %v803_v34 = vpop.permute.xlu1 %802 }
 0x47b   : > { %v805_v39 = vpop.permute.xlu1 %804 }
 0x47c   : > { %v812_v42 = vcombine.low %v801_v30, %v805_v39  ;;  %v813_v43 = vcombine.high %v801_v30, %v805_v39 }
 0x47e   : > { %v820_v48 = vrot.slane %v812_v42, %v3655_v41  ;;  %v827_v49 = vrot.slane %v813_v43, %v3655_v41 }
 0x47f   : > { %v807_v44 = vpop.permute.xlu1 %806 }
 0x480   : > { %v828_v45 = vcombine.low %v803_v34, %v807_v44  ;;  %v829_v46 = vcombine.high %v803_v34, %v807_v44 }
 0x482   : > { %v836_v50 = vrot.slane %v828_v45, %v3655_v41  ;;  %v843_v51 = vrot.slane %v829_v46, %v3655_v41 }
 0x483   : > { %v717_v52 = vpop.permute.xlu1 %716 }
 0x484   : > { %v844_v53 = vcombine.low %v820_v48, %v836_v50  ;;  %v845_v54 = vcombine.high %v820_v48, %v836_v50  ;;  %v860_v55 = vcombine.low %v827_v49, %v843_v51  ;;  %v861_v56 = vcombine.high %v827_v49, %v843_v51 }
 0x485   : > { %v741_v62 = vcombine.low %v717_v52, %v723_v57  ;;  %v742_v63 = vcombine.high %v717_v52, %v723_v57 }
 0x486   : > { %v852_v58 = vrot.slane %v844_v53, %v3657_v47  ;;  %v859_v59 = vrot.slane %v845_v54, %v3657_v47  ;;  %v868_v60 = vrot.slane %v860_v55, %v3657_v47  ;;  %v875_v61 = vrot.slane %v861_v56, %v3657_v47 }
 0x487   : > { %v720_v1 = vpop.permute.xlu1 %719  ;;  %v749_v13 = vrot.slane %v741_v62, %v3655_v41  ;;  %v756_v14 = vrot.slane %v742_v63, %v3655_v41 }
 0x488   : > { %v1032_v2 = vcombine.low %v852_v58, %v859_v59  ;;  %v2271_v3 = vcombine.high %v852_v58, %v859_v59  ;;  %v1048_v4 = vcombine.low %v868_v60, %v875_v61  ;;  %v2272_v5 = vcombine.high %v868_v60, %v875_v61 }
 0x489   : > { %v725_v6 = vcombine.low %v3639_v26, %v720_v1  ;;  %v726_v7 = vcombine.high %v3639_v26, %v720_v1 }
 0x48a   : > { %v1039_v9 = vrot.slane %v1032_v2, %v3655_v41  ;;  %v1047_v10 = vrot.slane %v2271_v3, %v3655_v41  ;;  %v1055_v11 = vrot.slane %v1048_v4, %v3655_v41  ;;  %v1063_v12 = vrot.slane %v2272_v5, %v3655_v41 }
 0x48b   : > { %v733_v15 = vrot.slane %v725_v6, %v3655_v41  ;;  %v740_v16 = vrot.slane %v726_v7, %v3655_v41 }
 0x48c   : > { %v1064_v17 = vcombine.low %v1039_v9, %v1047_v10  ;;  %v1080_v18 = vcombine.low %v1055_v11, %v1063_v12  ;;  %v1065_v19 = vcombine.high %v1039_v9, %v1047_v10  ;;  %v1081_v20 = vcombine.high %v1055_v11, %v1063_v12 }
 0x48d   : > { %v757_v21 = vcombine.low %v733_v15, %v749_v13  ;;  %v758_v23 = vcombine.high %v733_v15, %v749_v13  ;;  %v773_v24 = vcombine.low %v740_v16, %v756_v14  ;;  %v774_v25 = vcombine.high %v740_v16, %v756_v14 }
 0x48e   : > { %v1072_v26 = vrot.slane %v1064_v17, %v3657_v47  ;;  %v1088_v30 = vrot.slane %v1080_v18, %v3657_v47  ;;  %v1079_v31 = vrot.slane %v1065_v19, %v3657_v47  ;;  %v1095_v32 = vrot.slane %v1081_v20, %v3657_v47 }
 0x48f   : > { %v765_v33 = vrot.slane %v757_v21, %v3657_v47  ;;  %v772_v34 = vrot.slane %v758_v23, %v3657_v47  ;;  %v781_v35 = vrot.slane %v773_v24, %v3657_v47  ;;  %v788_v36 = vrot.slane %v774_v25, %v3657_v47 }
 0x490   : > { %v1096_v37 = vcombine.low %v1072_v26, %v1088_v30  ;;  %v1098_v38 = vcombine.low %v1079_v31, %v1095_v32  ;;  %v1097_v53 = vcombine.high %v1072_v26, %v1088_v30  ;;  %v1099_v5 = vcombine.high %v1079_v31, %v1095_v32 }
 0x491   : > { %v960_v39 = vcombine.low %v765_v33, %v772_v34  ;;  %v2269_v40 = vcombine.high %v765_v33, %v772_v34  ;;  %v976_v42 = vcombine.low %v781_v35, %v788_v36  ;;  %v2270_v43 = vcombine.high %v781_v35, %v788_v36 }
 0x492   : > { %v1100_v44 = vpack.c.bf16 %v1096_v37, %v1096_v37  ;;  %v1102_v45 = vpack.c.bf16 %v1098_v38, %v1098_v38  ;;  %v1101_v63 = vpack.c.bf16 %v1097_v53, %v1097_v53  ;;  %v1103_v7 = vpack.c.bf16 %v1099_v5, %v1099_v5 }
 0x493   : > { %v967_v46 = vrot.slane %v960_v39, %v3655_v41  ;;  %v975_v48 = vrot.slane %v2269_v40, %v3655_v41  ;;  %v983_v49 = vrot.slane %v976_v42, %v3655_v41  ;;  %v991_v50 = vrot.slane %v2270_v43, %v3655_v41 }
 0x494   : > { %v1181_v51 = vsel %vm1176_vm2, %v1100_v44, 0  ;;  %v1273_v52 = vsel %vm1176_vm2, %v1102_v45, 0  ;;  %v1227_v4 = vsel %vm1176_vm2, %v1101_v63, 0  ;;  %v1319_v10 = vsel %vm1176_vm2, %v1103_v7, 0 }
 0x495   : > { %v992_v54 = vcombine.low %v967_v46, %v975_v48  ;;  %v1008_v55 = vcombine.low %v983_v49, %v991_v50  ;;  %2352 = vmatpush3.bf16.xpose.msra.mxu0 %v1181_v51  ;;  %2364 = vmatpush3.bf16.xpose.msra.mxu1 %v1273_v52  ;;  %v993_v56 = vcombine.high %v967_v46, %v975_v48 }
 0x496   : > { %2357 = vmatprep.subr.bf16.mxu0 %v3127_v8  ;;  %v1009_v57 = vcombine.high %v983_v49, %v991_v50  ;;  %2375 = vmatprep.subr.bf16.mxu1 %v3127_v8 }
 0x497   : > { %v1000_v58 = vrot.slane %v992_v54, %v3657_v47  ;;  %v1016_v59 = vrot.slane %v1008_v55, %v3657_v47  ;;  %v1007_v60 = vrot.slane %v993_v56, %v3657_v47 }
 0x498   : > { %v1023_v61 = vrot.slane %v1009_v57, %v3657_v47 }
 0x499   : > { %v1024_v62 = vcombine.low %v1000_v58, %v1016_v59  ;;  %v1025_v6 = vcombine.high %v1000_v58, %v1016_v59 }
 0x49a   : > { %v1026_v1 = vcombine.low %v1007_v60, %v1023_v61  ;;  %v1027_v11 = vcombine.high %v1007_v60, %v1023_v61 }
 0x49b   : > { %v1028_v2 = vpack.c.bf16 %v1024_v62, %v1024_v62  ;;  %v1029_v9 = vpack.c.bf16 %v1025_v6, %v1025_v6 }
 0x49c   : > { %v1030_v3 = vpack.c.bf16 %v1026_v1, %v1026_v1  ;;  %v1031_v12 = vpack.c.bf16 %v1027_v11, %v1027_v11 }
 0x49d   : > { %2354 = vmatmul.mubr.msk.bf16.vlgmr.msra.gmra.mrb[4].mxu0 %vm1176_vm2, %v1028_v2 }
 0x49e   : > { %2366 = vmatmul.mubr.msk.bf16.vlgmr.msra.gmra.mrb[0].mxu1 %vm1176_vm2, %v1030_v3  ;;  %2358 = vmatpush3.bf16.xpose.msra.mxu0 %v1227_v4 }
 0x49f   : > { %2359 = vmatprep.mubr.msk.bf16.mxu0 %vm3128_vm1, %v3127_v8  ;;  %2369 = vmatprep.subr.bf16.mxu0 %v3127_v8 }
 0x4a0   : > { %2377 = vmatprep.mubr.msk.bf16.mxu1 %vm3128_vm1, %v3127_v8 }
 0x4a5   : > { %2360 = vmatmul.mubr.msk.bf16.vlgmr.msra.gmra.mrb[8].mxu0 %vm1176_vm2, %v1029_v9 }
 0x4a6   : > { %2370 = vmatpush3.bf16.xpose.msra.mxu0 %v1319_v10  ;;  %2371 = vmatprep.mubr.msk.bf16.mxu0 %vm3128_vm1, %v3127_v8 }
 0x4a7   : > { %2381 = vmatprep.subr.bf16.mxu0 %v3127_v8 }
 0x4ad   : > { %2372 = vmatmul.mubr.msk.bf16.vlgmr.msra.gmra.mrb[12].mxu0 %vm1176_vm2, %v1031_v12 }
 0x4ae   : > { %2383 = vmatprep.mubr.msk.bf16.mxu0 %vm3128_vm1, %v3127_v8 }
 0x570   : > { %v1217_v13 = vpop.f32.mrb[4].mxu0 }
 0x571   : > { %v1309_v14 = vpop.f32.mrb[0].mxu1  ;;  %v2355_v15 = vpop.f32.mrb[5].mxu0  ;;  %v1361_v16 = vsel %vm1176_vm2, %v1217_v13, -inf }
 0x572   : > { %v2367_v17 = vpop.f32.mrb[1].mxu1  ;;  %v1367_v18 = vsel %vm1176_vm2, %v1309_v14, -inf  ;;  %1362 = vmax.xlane.f32.xlu1 %v1361_v16  ;;  %v1220_v19 = vpop.f32.mrb[6].mxu0 }
 0x573   : > { %1368 = vmax.xlane.f32.xlu0 %v1367_v18  ;;  %v1312_v20 = vpop.f32.mrb[2].mxu1  ;;  %v2356_v21 = vpop.f32.mrb[7].mxu0 }
 0x574   : > { %v2368_v23 = vpop.f32.mrb[3].mxu1 }
 0x578   : > { %v1263_v24 = vpop.f32.mrb[8].mxu0 }
 0x579   : > { %v2361_v25 = vpop.f32.mrb[9].mxu0  ;;  %v1364_v26 = vsel %vm1176_vm2, %v1263_v24, -inf }
 0x57a   : > { %1365 = vmax.xlane.f32.xlu0 %v1364_v26  ;;  %v1266_v30 = vpop.f32.mrb[10].mxu0 }
 0x57b   : > { %v2362_v31 = vpop.f32.mrb[11].mxu0 }
 0x580   : > { %v1355_v32 = vpop.f32.mrb[12].mxu0 }
 0x581   : > { %v2373_v33 = vpop.f32.mrb[13].mxu0  ;;  %v1370_v34 = vsel %vm1176_vm2, %v1355_v32, -inf }
 0x582   : > { %1371 = vmax.xlane.f32.xlu1 %v1370_v34  ;;  %v1358_v35 = vpop.f32.mrb[14].mxu0 }
 0x583   : > { %v2374_v36 = vpop.f32.mrb[15].mxu0 }
 0x590   : > { %880 = vrot.lane.b32.xlu0 %v3634_v22, %s3135_s16 }
 0x593   : > { %882 = vrot.lane.b32.xlu1 %v3644_v27, %s3135_s16 }
 0x5ff   : > { %v1363_v37 = vpop.xlane.xlu1 %1362 }
 0x600   : > { %v1373_v38 = vsub.f32 %v1217_v13, %v1363_v37  ;;  %v1369_v40 = vpop.xlane.xlu0 %1368 }
 0x601   : > { %v1375_v51 = vsub.f32 %v1309_v14, %v1369_v40 }
 0x602   : > { %v1377_v39 = vmul.f32 1.442695, %v1373_v38 }
 0x603   : > { %v1381_v52 = vmul.f32 1.442695, %v1375_v51 }
 0x604   : > { %2632 = vpow2.f32 %v1377_v39 }
 0x607   : > { %v1366_v42 = vpop.xlane.xlu0 %1365 }
 0x608   : > { %v1374_v43 = vsub.f32 %v1263_v24, %v1366_v42 }
 0x60a   : > { %v1379_v44 = vmul.f32 1.442695, %v1374_v43 }
 0x60c   : > { %2634 = vpow2.f32 %v1379_v44 }
 0x60e   : > { %v3719_v45 = vpop.eup %2632 }
 0x60f   : > { %v1385_v46 = vsel %vm1176_vm2, %v3719_v45, 0.0  ;;  %v1372_v27 = vpop.xlane.xlu1 %1371 }
 0x610   : > { %1386 = vadd.xlane.f32.xlu0 %v1385_v46  ;;  %v1376_v49 = vsub.f32 %v1355_v32, %v1372_v27 }
 0x612   : > { %v1383_v50 = vmul.f32 1.442695, %v1376_v49 }
 0x613   : > { %v883_v57 = vpop.permute.xlu1 %882 }
 0x614   : > { %2636 = vpow2.f32 %v1383_v50 }
 0x615   : > { %2638 = vpow2.f32 %v1381_v52 }
 0x616   : > { %v3723_v48 = vpop.eup %2634 }
 0x617   : > { %v1388_v22 = vsel %vm1176_vm2, %v3723_v48, 0.0 }
 0x618   : > { %1389 = vadd.xlane.f32.xlu1 %v1388_v22 }
 0x61e   : > { %v3729_v53 = vpop.eup %2636 }
 0x61f   : > { %v1394_v54 = vsel %vm1176_vm2, %v3729_v53, 0.0  ;;  %v3733_v55 = vpop.eup %2638 }
 0x626   : > { %886 = vrot.lane.b32.xlu0 %v3650_v29, %s3135_s16  ;;  %v1391_v29 = vsel %vm1176_vm2, %v3733_v55, 0.0 }
 0x629   : > { %884 = vrot.lane.b32.xlu1 %v3647_v28, %s3135_s16  ;;  %v881_v28 = vpop.permute.xlu0 %880  ;;  %s3822_s16 = scalar_lea.hbm %s3926_s13, %s2306_s17 }
 0x645   : > { %1395 = vadd.xlane.f32.xlu0 %v1394_v54 }
 0x64d   : > { %1392 = vadd.xlane.f32.xlu1 %v1391_v29 }
 0x69d   : > { %v1387_v56 = vpop.xlane.xlu0 %1386 }
 0x69e   : > { %2640 = vrcp.f32 %v1387_v56 }
 0x6a1   : > { %v887_v58 = vpop.permute.xlu0 %886 }
 0x6a2   : > { %v908_v60 = vcombine.low %v883_v57, %v887_v58  ;;  %v909_v61 = vcombine.high %v883_v57, %v887_v58 }
 0x6a4   : > { %v916_v2 = vrot.slane %v908_v60, %v3655_v41  ;;  %v923_v3 = vrot.slane %v909_v61, %v3655_v41 }
 0x6a5   : > { %v1390_v59 = vpop.xlane.xlu1 %1389 }
 0x6a6   : > { %2642 = vrcp.f32 %v1390_v59 }
 0x6a8   : > { %v2641_v31 = vpop.eup %2640 }
 0x6a9   : > { %v885_v62 = vpop.permute.xlu1 %884  ;;  %v1401_v42 = vmul.f32 %v2641_v31, %v3719_v45 }
 0x6aa   : > { %v892_v63 = vcombine.low %v881_v28, %v885_v62  ;;  %v893_v1 = vcombine.high %v881_v28, %v885_v62 }
 0x6ab   : > { %v1405_v51 = vpack.c.bf16 %v1401_v42, %v1401_v42 }
 0x6ac   : > { %v900_v4 = vrot.slane %v892_v63, %v3655_v41  ;;  %v907_v5 = vrot.slane %v893_v1, %v3655_v41 }
 0x6ae   : > { %v924_v6 = vcombine.low %v900_v4, %v916_v2  ;;  %v925_v7 = vcombine.high %v900_v4, %v916_v2  ;;  %v940_v9 = vcombine.low %v907_v5, %v923_v3  ;;  %v941_v10 = vcombine.high %v907_v5, %v923_v3 }
 0x6b0   : > { %v932_v11 = vrot.slane %v924_v6, %v3657_v47  ;;  %v939_v12 = vrot.slane %v925_v7, %v3657_v47  ;;  %v948_v13 = vrot.slane %v940_v9, %v3657_v47  ;;  %v955_v14 = vrot.slane %v941_v10, %v3657_v47  ;;  %v2643_v36 = vpop.eup %2642 }
 0x6b1   : > { %v1402_v43 = vmul.f32 %v2643_v36, %v3723_v48 }
 0x6b2   : > { %v1104_v15 = vcombine.low %v932_v11, %v939_v12  ;;  %v2273_v16 = vcombine.high %v932_v11, %v939_v12  ;;  %v1120_v17 = vcombine.low %v948_v13, %v955_v14  ;;  %v2274_v18 = vcombine.high %v948_v13, %v955_v14 }
 0x6b3   : > { %v1406_v52 = vpack.c.bf16 %v1402_v43, %v1402_v43 }
 0x6b4   : > { %v1111_v19 = vrot.slane %v1104_v15, %v3655_v41  ;;  %v1119_v20 = vrot.slane %v2273_v16, %v3655_v41  ;;  %v1127_v21 = vrot.slane %v1120_v17, %v3655_v41  ;;  %v1135_v23 = vrot.slane %v2274_v18, %v3655_v41 }
 0x6b6   : > { %v1136_v24 = vcombine.low %v1111_v19, %v1119_v20  ;;  %v1152_v25 = vcombine.low %v1127_v21, %v1135_v23  ;;  %v1137_v26 = vcombine.high %v1111_v19, %v1119_v20  ;;  %v1153_v30 = vcombine.high %v1127_v21, %v1135_v23 }
 0x6b8   : > { %v1144_v32 = vrot.slane %v1136_v24, %v3657_v47  ;;  %v1160_v33 = vrot.slane %v1152_v25, %v3657_v47  ;;  %v1151_v34 = vrot.slane %v1137_v26, %v3657_v47  ;;  %v1167_v35 = vrot.slane %v1153_v30, %v3657_v47  ;;  %v2618_v26 = vld [vmem:[#allocation11] sm:$0xff]  }
 0x6ba   : > { %v1168_v37 = vcombine.low %v1144_v32, %v1160_v33  ;;  %v1169_v38 = vcombine.high %v1144_v32, %v1160_v33  ;;  %v1170_v39 = vcombine.low %v1151_v34, %v1167_v35  ;;  %v1171_v40 = vcombine.high %v1151_v34, %v1167_v35 }
 0x6bc   : > { %v1172_v44 = vpack.c.bf16 %v1168_v37, %v1168_v37  ;;  %v1173_v46 = vpack.c.bf16 %v1169_v38, %v1169_v38  ;;  %v1174_v49 = vpack.c.bf16 %v1170_v39, %v1170_v39  ;;  %v1175_v50 = vpack.c.bf16 %v1171_v40, %v1171_v40  ;;  %v2619_v38 = vld [vmem:[#allocation11 + $0x8] sm:$0xff]  }
 0x6be   : > { %v1414_v22 = vsel %vm1412_vm3, %v1172_v44, 0  ;;  %v1460_v27 = vsel %vm1412_vm3, %v1173_v46, 0  ;;  %v1506_v45 = vsel %vm1412_vm3, %v1174_v49, 0  ;;  %v1552_v48 = vsel %vm1412_vm3, %v1175_v50, 0 }
 0x6bf   : > { %2376 = vmatpush3.bf16.msra.mxu1 %v1414_v22  ;;  %2382 = vmatpush3.bf16.msra.mxu0 %v1460_v27 }
 0x6c0   : > { %2387 = vmatprep.subr.bf16.mxu1 %v3127_v8  ;;  %2393 = vmatprep.subr.bf16.mxu0 %v3127_v8 }
 0x6c2   : > { %2378 = vmatmul.mubr.msk.bf16.vlgmr.msra.gmra.mrb[4].mxu1 %vm1176_vm2, %v1405_v51  ;;  %2384 = vmatmul.mubr.msk.bf16.vlgmr.msra.gmra.mrb[16].mxu0 %vm1176_vm2, %v1406_v52 }
 0x6c3   : > { %2388 = vmatpush3.bf16.msra.mxu1 %v1506_v45  ;;  %2394 = vmatpush3.bf16.msra.mxu0 %v1552_v48 }
 0x6c4   : > { %2395 = vmatprep.mubr.msk.bf16.mxu0 %vm3128_vm1, %v3127_v8  ;;  %2389 = vmatprep.mubr.msk.bf16.mxu1 %vm3128_vm1, %v3127_v8 }
 0x6c5   : > { %2399 = vmatprep.subr.bf16.mxu1 %v3127_v8  ;;  %2407 = vmatprep.subr.bf16.mxu0 %v3127_v8 }
 0x6d2   : > { %v1396_v54 = vpop.xlane.xlu0 %1395 }
 0x6d3   : > { %2644 = vrcp.f32 %v1396_v54 }
 0x6da   : > { %v1393_v29 = vpop.xlane.xlu1 %1392 }
 0x6db   : > { %2646 = vrcp.f32 %v1393_v29 }
 0x6dd   : > { %v2645_v28 = vpop.eup %2644 }
 0x6de   : > { %v1404_v56 = vmul.f32 %v2645_v28, %v3729_v53 }
 0x6e0   : > { %v1408_v57 = vpack.c.bf16 %v1404_v56, %v1404_v56 }
 0x6e2   : > { %2396 = vmatmul.mubr.msk.bf16.vlgmr.msra.gmra.mrb[20].mxu0 %vm1176_vm2, %v1408_v57 }
 0x6e3   : > { %2411 = vmatprep.mubr.msk.bf16.mxu0 %vm3128_vm1, %v3127_v8 }
 0x6e5   : > { %v2647_v58 = vpop.eup %2646 }
 0x6e6   : > { %v1403_v59 = vmul.f32 %v2647_v58, %v3733_v55 }
 0x6e8   : > { %v1407_v60 = vpack.c.bf16 %v1403_v59, %v1403_v59 }
 0x6ea   : > { %2390 = vmatmul.mubr.msk.bf16.vlgmr.msra.gmra.mrb[8].mxu1 %vm1176_vm2, %v1407_v60  ;;  %v2285_v60 = vld [vmem:[#allocation13] ss:$0 sm:$0xff] }
 0x6eb   : > { %2403 = vmatprep.mubr.msk.bf16.mxu1 %vm3128_vm1, %v3127_v8  ;;  %2400 = vmatpush3.bf16.msra.mxu1 %v2618_v26  ;;  %v2627_v26 = vld [vmem:[#allocation20 + $0x28] sm:$0xff]  }
 0x6ec   : > { %2401 = vmatprep.subr.bf16.mxu1 %v3127_v8 }
 0x6ef   : > { %2402 = vmatpush3.bf16.msra.mxu1 %v2619_v38 }
 0x6f0   : > { %2415 = vmatprep.subr.bf16.mxu1 %v3127_v8 }
 0x795   : > { %v1450_v61 = vpop.f32.mrb[4].mxu1  ;;  %v1496_v62 = vpop.f32.mrb[16].mxu0 }
 0x796   : > { %v2379_v63 = vpop.f32.mrb[5].mxu1  ;;  %v2385_v1 = vpop.f32.mrb[17].mxu0 }
 0x797   : > { %v1453_v53 = vpop.f32.mrb[6].mxu1  ;;  %v1499_v2 = vpop.f32.mrb[18].mxu0 }
 0x798   : > { %v2380_v3 = vpop.f32.mrb[7].mxu1  ;;  %v2386_v4 = vpop.f32.mrb[19].mxu0 }
 0x7b5   : > { %v1588_v5 = vpop.f32.mrb[20].mxu0 }
 0x7b6   : > { %v1610_v6 = vcombine.low %v1496_v62, %v1588_v5  ;;  %v1611_v7 = vcombine.high %v1496_v62, %v1588_v5  ;;  %v2397_v9 = vpop.f32.mrb[21].mxu0 }
 0x7b7   : > { %v1591_v10 = vpop.f32.mrb[22].mxu0 }
 0x7b8   : > { %v2398_v55 = vpop.f32.mrb[23].mxu0  ;;  %v1618_v16 = vrot.slane %v1610_v6, %v3655_v41  ;;  %v1625_v17 = vrot.slane %v1611_v7, %v3655_v41  ;;  %v2620_v10 = vld [vmem:[#allocation17] sm:$0xff]  }
 0x7b9   : > { %2408 = vmatpush3.bf16.msra.mxu0 %v2620_v10  ;;  %v2621_v55 = vld [vmem:[#allocation17 + $0x8] sm:$0xff]  }
 0x7ba   : > { %2409 = vmatprep.subr.bf16.mxu0 %v3127_v8 }
 0x7bd   : > { %v1542_v11 = vpop.f32.mrb[8].mxu1  ;;  %2410 = vmatpush3.bf16.msra.mxu0 %v2621_v55 }
 0x7be   : > { %v1594_v12 = vcombine.low %v1450_v61, %v1542_v11  ;;  %v1595_v13 = vcombine.high %v1450_v61, %v1542_v11  ;;  %v2391_v14 = vpop.f32.mrb[9].mxu1 }
 0x7bf   : > { %v1545_v15 = vpop.f32.mrb[10].mxu1  ;;  %v2289_v14 = vld [vmem:[#allocation14] ss:$0 sm:$0xff] }
 0x7c0   : > { %v1602_v18 = vrot.slane %v1594_v12, %v3655_v41  ;;  %v1609_v19 = vrot.slane %v1595_v13, %v3655_v41  ;;  %v2392_v20 = vpop.f32.mrb[11].mxu1 }
 0x7c1   : > { %v2622_v20 = vld [vmem:[#allocation20] sm:$0xff]  }
 0x7c2   : > { %v1626_v21 = vcombine.low %v1602_v18, %v1618_v16  ;;  %v1627_v23 = vcombine.high %v1602_v18, %v1618_v16  ;;  %v1642_v24 = vcombine.low %v1609_v19, %v1625_v17  ;;  %v1643_v25 = vcombine.high %v1609_v19, %v1625_v17  ;;  %v2290_v16 = vld [vmem:[#allocation16] ss:$0 sm:$0xff] }
 0x7c4   : > { %v1634_v30 = vrot.slane %v1626_v21, %v3657_v47  ;;  %v1641_v31 = vrot.slane %v1627_v23, %v3657_v47  ;;  %v1650_v32 = vrot.slane %v1642_v24, %v3657_v47  ;;  %v1657_v33 = vrot.slane %v1643_v25, %v3657_v47  ;;  %v2623_v21 = vld [vmem:[#allocation20 + $0x8] sm:$0xff]   ;;  %v2624_v23 = vld [vmem:[#allocation20 + $0x10] sm:$0xff]   ;;  %v2625_v24 = vld [vmem:[#allocation20 + $0x18] sm:$0xff]  }
 0x7c5   : > { %v2626_v25 = vld [vmem:[#allocation20 + $0x20] sm:$0xff]  }
 0x7c6   : > { %v1662_v34 = vcombine.low %v1634_v30, %v1641_v31  ;;  %v2283_v35 = vcombine.high %v1634_v30, %v1641_v31  ;;  %v1678_v36 = vcombine.low %v1650_v32, %v1657_v33  ;;  %v2284_v37 = vcombine.high %v1650_v32, %v1657_v33  ;;  %v2628_v30 = vld [vmem:[#allocation20 + $0x30] sm:$0xff]   ;;  %v2629_v31 = vld [vmem:[#allocation20 + $0x38] sm:$0xff]  }
 0x7c7   : > { %v2291_v32 = vld [vmem:[#allocation19] ss:$0 sm:$0xff] }
 0x7c8   : > { %v1669_v39 = vrot.slane %v1662_v34, %v3655_v41  ;;  %v1677_v40 = vrot.slane %v2283_v35, %v3655_v41  ;;  %v1685_v42 = vrot.slane %v1678_v36, %v3655_v41  ;;  %v1693_v43 = vrot.slane %v2284_v37, %v3655_v41 }
 0x7ca   : > { %v1695_v44 = vcombine.high %v1669_v39, %v1677_v40  ;;  %v1711_v46 = vcombine.high %v1685_v42, %v1693_v43  ;;  %v1694_v22 = vcombine.low %v1669_v39, %v1677_v40  ;;  %v1710_v27 = vcombine.low %v1685_v42, %v1693_v43 }
 0x7cc   : > { %v1709_v49 = vrot.slane %v1695_v44, %v3657_v47  ;;  %v1725_v50 = vrot.slane %v1711_v46, %v3657_v47  ;;  %v1702_v51 = vrot.slane %v1694_v22, %v3657_v47  ;;  %v1718_v52 = vrot.slane %v1710_v27, %v3657_v47  ;;  %v2296_v46 = vld [vmem:[#allocation22] ss:$0 sm:$0xff] }
 0x7ce   : > { %v1728_v45 = vcombine.low %v1709_v49, %v1725_v50  ;;  %v1727_v48 = vcombine.high %v1702_v51, %v1718_v52  ;;  %v1729_v54 = vcombine.high %v1709_v49, %v1725_v50  ;;  %v1726_v29 = vcombine.low %v1702_v51, %v1718_v52 }
 0x7d0   : > { %1735 = vrot.lane.b32.xlu1 %v1728_v45, %s3136_s22  ;;  %1731 = vrot.lane.b32.xlu0 %v1727_v48, %s3137_s30  ;;  %s3139_s22 = smov [#allocation23]  }
 0x7d1   : > { %s3024_s30 = sshll.u32 %s3139_s22, 4  ;;  %s3025_s30 = int_to_ptr.vmem [resolvable:$false] %s3024_s30 }
 0x7d2   : > { %p3027_p12 = scmp.lt.s32.totalorder %s3824_s24, %s3025_s30 }
 0x7d4   : > { %1739 = vrot.lane.b32.xlu1 %v1729_v54, %s3138_s2  ;;  %s3026_s2 = scalar_lea.vmem %s3025_s30, 256 }
 0x7d5   : > { %p3028_p8 = scmp.lt.s32.totalorder %s3026_s2, %s3020_s15 }
 0x7d7   : > { %p3029_p5 = por %p3028_p8, %p3027_p12 }
 0x7d9   : > { %p3030_p7 = pnand %p3029_p5, %p3023_p11 }
 0x842   : > { %v1736_v41 = vpop.permute.xlu1 %1735  ;;  %v1732_v28 = vpop.permute.xlu0 %1731 }
 0x843   : > { %v1742_v56 = vsel %vm1176_vm2, %v1726_v29, %v1732_v28 }
 0x844   : > { %v1744_v58 = vsel %vm1743_vm4, %v1742_v56, %v1736_v41 }
 0x846   : > { %v1740_v57 = vpop.permute.xlu1 %1739 }
 0x847   : > { %v1746_v59 = vsel %vm1745_vm5, %v1744_v58, %v1740_v57 }
 0x848   : > { %v1747_v47 = vpack.c.bf16 %v1746_v59, %v1746_v59 }
 0x84a   : > { %2404 = vmatmul.mubr.msk.bf16.vlgmr.msra.gmra.mrb[12].mxu1 %vm618_vm0, %v1747_v47 }
 0x84b   : > { %2431 = vmatprep.mubr.msk.bf16.mxu1 %vm3128_vm1, %v3127_v8  ;;  %2416 = vmatpush3.bf16.msra.mxu1 %v2622_v20 }
 0x84c   : > { %2417 = vmatprep.subr.bf16.mxu1 %v3127_v8 }
 0x84f   : > { %2418 = vmatpush3.bf16.msra.mxu1 %v2623_v21 }
 0x850   : > { %2419 = vmatprep.subr.bf16.mxu1 %v3127_v8 }
 0x853   : > { %2420 = vmatpush3.bf16.msra.mxu1 %v2624_v23 }
 0x854   : > { %2421 = vmatprep.subr.bf16.mxu1 %v3127_v8 }
 0x857   : > { %2422 = vmatpush3.bf16.msra.mxu1 %v2625_v24 }
 0x858   : > { %2423 = vmatprep.subr.bf16.mxu1 %v3127_v8 }
 0x85b   : > { %2424 = vmatpush3.bf16.msra.mxu1 %v2626_v25 }
 0x85c   : > { %2425 = vmatprep.subr.bf16.mxu1 %v3127_v8 }
 0x85f   : > { %2426 = vmatpush3.bf16.msra.mxu1 %v2627_v26 }
 0x860   : > { %2427 = vmatprep.subr.bf16.mxu1 %v3127_v8 }
 0x863   : > { %2428 = vmatpush3.bf16.msra.mxu1 %v2628_v30 }
 0x864   : > { %2429 = vmatprep.subr.bf16.mxu1 %v3127_v8 }
 0x867   : > { %2430 = vmatpush3.bf16.msra.mxu1 %v2629_v31 }
 0x91d   : > { %v1808_v61 = vpop.f32.mrb[12].mxu1 }
 0x91e   : > { %v1809_v62 = vadd.f32 %v2285_v60, %v1808_v61  ;;  %v2405_v63 = vpop.f32.mrb[13].mxu1 }
 0x91f   : > { %v1811_v1 = vpop.f32.mrb[14].mxu1 }
 0x920   : > { %v3800_v53 = vadd.f32 %v1809_v62, %v3617_v0  ;;  %v2406_v2 = vpop.f32.mrb[15].mxu1 }
 0x922   : > { %v1817_v3 = vsel %vm618_vm0, %v3800_v53, 0.0 }
 0x923   : > { %1818 = vadd.xlane.f32.xlu0 %v1817_v3 }
 0x9b0   : > { %v1819_v4 = vpop.xlane.xlu0 %1818 }
 0x9b1   : > { %v1820_v5 = vmul.f32 0.03125, %v1819_v4 }
 0x9b3   : > { %v1821_v6 = vsub.f32 %v3800_v53, %v1820_v5 }
 0x9b5   : > { %v1822_v7 = vmul.f32 %v1821_v6, %v1821_v6 }
 0x9b7   : > { %v1823_v9 = vsel %vm618_vm0, %v1822_v7, 0.0 }
 0x9b8   : > { %1824 = vadd.xlane.f32.xlu1 %v1823_v9 }
 0xa45   : > { %v1825_v0 = vpop.xlane.xlu1 %1824 }
 0xa46   : > { %v1826_v11 = vmul.f32 0.03125, %v1825_v0 }
 0xa48   : > { %v1827_v12 = vadd.f32 1e-05, %v1826_v11 }
 0xa4a   : > { %2648 = vrsqrt.f32 %v1827_v12 }
 0xa54   : > { %v2649_v13 = vpop.eup %2648 }
 0xa55   : > { %v1829_v15 = vmul.f32 %v2649_v13, %v1821_v6 }
 0xa57   : > { %v1836_v17 = vmul.f32 %v2289_v14, %v1829_v15 }
 0xa59   : > { %v1843_v18 = vadd.f32 %v2290_v16, %v1836_v17 }
 0xa5b   : > { %v1844_v19 = vpack.c.bf16 %v1843_v18, %v1843_v18 }
 0xa5d   : > { %2412 = vmatmul.mubr.msk.bf16.vlgmr.msra.gmra.mrb[24].mxu0 %vm618_vm0, %v1844_v19 }
 0xb30   : > { %v1905_v33 = vpop.f32.mrb[24].mxu0 }
 0xb31   : > { %v1906_v34 = vadd.f32 %v2291_v32, %v1905_v33  ;;  %v2413_v35 = vpop.f32.mrb[25].mxu0 }
 0xb32   : > { %v1908_v36 = vpop.f32.mrb[26].mxu0 }
 0xb33   : > { %v2295_v37 = vmul.f32 -1.702, %v1906_v34  ;;  %v2414_v38 = vpop.f32.mrb[27].mxu0 }
 0xb35   : > { %v1913_v39 = vmul.f32 1.442695, %v2295_v37 }
 0xb37   : > { %2650 = vpow2.f32 %v1913_v39 }
 0xb41   : > { %v2651_v40 = vpop.eup %2650 }
 0xb42   : > { %v1915_v42 = vadd.f32 1.0, %v2651_v40 }
 0xb44   : > { %2652 = vrcp.f32 %v1915_v42 }
 0xb4e   : > { %v2653_v43 = vpop.eup %2652 }
 0xb4f   : > { %v1918_v44 = vmul.f32 %v2653_v43, %v1906_v34 }
 0xb51   : > { %v1919_v8 = vpack.c.bf16 %v1918_v44, %v1918_v44 }
 0xb53   : > { %2432 = vmatmul.mubr.bf16.vlgmr.msra.gmra.mrb[16].mxu1 %v1919_v8 }
 0xc26   : > { %v2025_v22 = vpop.f32.mrb[16].mxu1 }
 0xc27   : > { %v2026_v27 = vadd.f32 %v2296_v46, %v2025_v22  ;;  %v2433_v49 = vpop.f32.mrb[17].mxu1 }
 0xc28   : > { %v2028_v50 = vpop.f32.mrb[18].mxu1 }
 0xc29   : > { %v2031_v51 = vadd.f32 %v2026_v27, %v3800_v53  ;;  %v2434_v52 = vpop.f32.mrb[19].mxu1 }
 0xc2b   : > { %2032 = vst.msk [vmem:[%s613_s23] sm:$0xff] %vm618_vm0, %v2031_v51 }
 0xc2c   : > { %3033 = shalt.err (!%p3030_p7)
}
 0xc2d   : > { %s3034_s19 = scalar_lea.hbm %s3822_s16, 128  ;;  %s3038_s20 = scalar_lea.hbm %s3926_s13, 256 }
 0xc2e   : > { %p3035_p6 = scmp.ne.s32.totalorder %s3822_s16, %s3034_s19  ;;  %p3039_p13 = scmp.lt.u32.totalorder %s3822_s16, %s3926_s13 }
 0xc2f   : > { %p3040_p1 = scmp.lt.u32.totalorder %s3038_s20, %s3034_s19  ;;  %p3042_p2 = scmp.lt.u32.totalorder %s3034_s19, %s3822_s16 }
 0xc30   : > { %p3036_p9 = pnand %p3035_p6, %p3927_p0 }
 0xc31   : > { %p3041_p3 = por %p3040_p1, %p3039_p13 }
 0xc32   : > { %p3037_p4 = pneg %p3036_p9 }
 0xc33   : > { %p3043_p10 = por %p3042_p2, %p3041_p3 }
 0xc35   : > { %p3044_p11 = pnand %p3043_p10, %p3037_p4 }
 0xc37   : > { %3047 = shalt.err (!%p3044_p11)
}
 0xc38   : > { %2485 = dma.vmem_to_hbm [thread:$0]  (%p3927_p0), %s3824_s24, 128, %s3822_s16, %s2034_s0  }
 0xc39 PF: > { %s2059_s15 = sand.u32 1, %s3098_s25   ;;  %p3928_p12 = scmp.ne.s32.totalorder %s3908_s21, 0 }
 0xc3a   : > { %p3929_p8 = scmp.ge.s32.totalorder %s3110_s28, 2  ;;  %s2060_s30 = scalar_lea.sflag [#allocation4], %s2059_s15 }
 0xc3c   : > { %p2529_p5 = pnand %p3929_p8, %p3928_p12 }
 0xc3e   : > { %3093 = dma.done.wait (!%p2529_p5), %s2060_s30, 128  }
 0xc3f   : > { %3095 = vsyncadd (!%p2529_p5), %s2060_s30, 4294967168  ;;  %p32_p7 = scmp.ge.s32.totalorder %s3507_s18, 4   ;;  %s3930_s25 = smov %s3102_s26 }
 0xc40   : > { %s3931_s26 = smov %s3106_s27  ;;  %s3932_s27 = smov %s3518_s29 }
 0xc41   : > { %s3933_s28 = smov %s3507_s18  ;;  %34 = sbr.rel (!%p32_p7) target bundleno = 17 (0x11), region = 165 }
 0xc48   :  { %2065 = vsyncpa [#allocation3], 1 }
 0xc49   :  { %2067 = vsyncpa [#allocation3 + $0x1], 1 }
 0xc4a   :  { %2068 = vsyncpa [#allocation6], 1 }
 0xc4b   :  { %2069 = vsyncpa [#allocation9], 1 }
 0xc4c   :  { %2070 = vsyncpa [#allocation12], 1 }
 0xc4d   :  { %2071 = vsyncpa [#allocation15], 1 }
 0xc4e   :  { %2072 = vsyncpa [#allocation18], 1 }
 0xc4f   :  { %2073 = vsyncpa [#allocation21], 1 }
 0xc50   :  { %2074 = vsyncpa [#allocation4], 1 }
 0xc51   :  { %2076 = vsyncpa [#allocation4 + $0x1], 1 }

</bundles_post_ra>
